<compile_context>
chip_gen: v7x
topology: tpu7x:2x2x1
jax: 0.10.0
libtpu: 0.0.40
codegen_flags: <defaults>
</compile_context>

<pallas_src>
import functools

import numpy as np
import jax
import jax.numpy as jnp
from jax import lax
from jax.experimental import pallas as pl
from jax.experimental.pallas import tpu as pltpu


def _round_up(v: int, m: int) -> int:
    return (v + m - 1) // m * m


def _vmem_capacity_bytes() -> int:
    """Physical VMEM per TensorCore (128 MiB on v5e/v6e, 64 MiB on v7x)."""
    try:
        return int(pltpu.get_tpu_info().vmem_capacity_bytes)
    except Exception:
        return 64 * 1024 * 1024  # conservative fallback (v7x-sized)


# ---------------------------------------------------------------------------
# Kernel 1: truncated forward DFT (one MXU matmul per batch block)
#   x block   : (Bt, Cin, Np)  -> flattened to (Bt*Cin, Np)   [compute dtype]
#   fwd basis : (Np, 2*Mp) = [cos | -sin]                     (grid invariant)
#   output    : (Bt, Cin, 2*Mp)  (first Mp lanes = Re, last Mp = Im)
# ---------------------------------------------------------------------------
def _fwd_dft_kernel(x_ref, fb_ref, xf_ref):
    bt, cin, npad = x_ref.shape
    m2 = fb_ref.shape[1]
    x2 = x_ref[...].reshape(bt * cin, npad)
    xf = jnp.dot(x2, fb_ref[...], preferred_element_type=jnp.float32)
    xf_ref[...] = xf.reshape(bt, cin, m2).astype(xf_ref.dtype)


# ---------------------------------------------------------------------------
# Kernel 2: per-mode complex channel mixing as ONE mode-batched real matmul.
#   x2 : (Mt, B, 2*Cin)   last dim = [Re channels | Im channels]
#   w2 : (Mt, 2*Cin, 2*Cout) = [[wr, wi], [-wi, wr]] per mode
#   y  : (Mt, B, 2*Cout)  last dim = [Re channels | Im channels]
# ---------------------------------------------------------------------------
def _mode_mix_kernel(x2_ref, w2_ref, y_ref):
    dn = (((2,), (1,)), ((0,), (0,)))  # contract 2*Cin, batch over modes
    y = lax.dot_general(x2_ref[...], w2_ref[...], dn,
                        preferred_element_type=jnp.float32)
    y_ref[...] = y.astype(y_ref.dtype)


# ---------------------------------------------------------------------------
# Kernel 3: truncated inverse DFT (one MXU matmul per batch block)
#   y block   : (Bt, Cout, 2*Mp) -> flattened to (Bt*Cout, 2*Mp)
#   inv basis : (2*Mp, Np)       (grid invariant)
#   output    : (Bt, Cout, Np)   f32, lane-dense (Np % 128 == 0)
# ---------------------------------------------------------------------------
def _inv_dft_kernel(y_ref, ib_ref, o_ref):
    bt, cout, m2 = y_ref.shape
    npad = ib_ref.shape[1]
    y2 = y_ref[...].reshape(bt * cout, m2)
    out = jnp.dot(y2, ib_ref[...], preferred_element_type=jnp.float32)
    o_ref[...] = out.reshape(bt, cout, npad).astype(o_ref.dtype)


def _pick_batch_block(B, Cin_p, Cout_p, Np, M2, cbytes, vmem_budget):
    """Largest divisor of B whose per-step VMEM footprint (double-buffered
    blocked operands + grid-invariant basis + f32 matmul temp) fits the
    budget, capped so the grid has >= 4 steps when B allows (>= 2 pipelined
    steps per TensorCore on dual-TC chips)."""

    def usage(bt):
        k1 = (2 * bt * Cin_p * Np * cbytes       # x blocks (double-buffered)
              + 2 * bt * Cin_p * M2 * cbytes     # spectrum out blocks
              + 2 * Np * M2 * cbytes             # fwd basis
              + bt * Cin_p * M2 * 4)             # f32 matmul result temp
        k3 = (2 * bt * Cout_p * M2 * cbytes      # spectrum in blocks
              + 2 * M2 * Np * cbytes             # inv basis
              + 3 * bt * Cout_p * Np * 4)        # f32 out blocks + f32 temp
        return max(k1, k3)

    bt = B if B < 4 else max(1, B // 4)
    while bt > 1 and (B % bt or usage(bt) > vmem_budget):
        bt -= 1
    return max(1, bt)


def _pick_mode_block(Mp, B, Cin2, Cout2, cbytes, vmem_budget):
    """Mode-block size for K2 (Mp is a multiple of 64, so powers of two <= 64
    always divide it)."""

    def usage(mt):
        return (2 * mt * B * Cin2 * cbytes + 2 * mt * Cin2 * Cout2 * cbytes
                + 2 * mt * B * Cout2 * cbytes + mt * B * Cout2 * 4)

    mt = min(Mp, 64)
    while mt > 8 and (Mp % mt or usage(mt) > vmem_budget):
        mt //= 2
    while Mp % mt:
        mt -= 1
    return max(1, mt)


def spectral_conv1d(x, weights, *, compute_dtype=jnp.bfloat16,
                    basis_dtype=None, block_batch=None):
    """SpectralConv1d forward.

    x:        (B, Cin, N) float
    weights:  (Cin, Cout, modes1, 2)  (real, imag)
    returns:  (B, Cout, N) float32

    basis_dtype: dtype of the DFT bases (defaults to compute_dtype). For very
    large N with bf16, keep the bases f32 to bound summation error.
    """
    B, Cin, N = x.shape
    Cin_w, Cout, M, two = weights.shape
    assert Cin_w == Cin and two == 2 and M <= N // 2 + 1
    if basis_dtype is None:
        basis_dtype = compute_dtype

    # --- padding for TPU-friendly tiling (exact: zero pads contribute 0) ---
    Np = _round_up(N, 128)       # lane-dense spatial stores
    Cin_p = _round_up(Cin, 8)    # tile-aligned (Bt, C, N) -> (Bt*C, N) reshapes
    Cout_p = _round_up(Cout, 8)
    Mp = _round_up(M, 64)        # 2*Mp multiple of 128 -> lane-dense spectrum
    M2 = 2 * Mp
    cbytes = jnp.dtype(compute_dtype).itemsize
    bbytes = jnp.dtype(basis_dtype).itemsize

    vmem_cap = _vmem_capacity_bytes()
    vmem_limit = min(int(vmem_cap * 3 // 4), 112 * 1024 * 1024)
    vmem_budget = vmem_cap // 2  # leave headroom for compiler internal scratch

    # x: cast to compute dtype BEFORE the HBM round trip into K1
    x_p = x.astype(compute_dtype)
    if (Cin_p, Np) != (Cin, N):
        x_p = jnp.pad(x_p, ((0, 0), (0, Cin_p - Cin), (0, Np - N)))

    # 2x2 block complex-mix weight: W2[k] = [[wr, wi], [-wi, wr]]
    w = weights.astype(jnp.float32)
    if (Cin_p, Cout_p, Mp) != (Cin, Cout, M):
        w = jnp.pad(w, ((0, Cin_p - Cin), (0, Cout_p - Cout), (0, Mp - M), (0, 0)))
    wr = jnp.transpose(w[..., 0], (2, 0, 1))          # (Mp, Cin_p, Cout_p)
    wi = jnp.transpose(w[..., 1], (2, 0, 1))
    w2 = jnp.concatenate(
        [jnp.concatenate([wr, wi], axis=2),
         jnp.concatenate([-wi, wr], axis=2)], axis=1).astype(compute_dtype)
    # w2: (Mp, 2*Cin_p, 2*Cout_p)

    # --- DFT bases (host-side fp64 glue, then cast) ---
    n = np.arange(N, dtype=np.float64)[:, None]       # (N, 1)
    k = np.arange(Mp, dtype=np.float64)[None, :]      # (1, Mp)
    ang = 2.0 * np.pi * n * k / N                     # (N, Mp)
    fwd = np.concatenate([np.cos(ang), -np.sin(ang)], axis=1)    # (N, 2Mp)
    fwd = np.pad(fwd, ((0, Np - N), (0, 0)))          # zero rows for padded samples
    fb = jnp.asarray(fwd, dtype=basis_dtype)

    # Inverse (hermitian-symmetric) basis: out[n] = sum_k wk*(Re*cos - Im*sin)/N
    wk = np.full((Mp, 1), 2.0)
    wk[0, 0] = 1.0
    if N % 2 == 0 and M - 1 == N // 2:                # Nyquist bin counted once
        wk[M - 1, 0] = 1.0
    inv = np.concatenate([wk * np.cos(ang.T), -wk * np.sin(ang.T)], axis=0) / N
    inv = np.pad(inv, ((0, 0), (0, Np - N)))          # (2Mp, Np)
    ib = jnp.asarray(inv, dtype=basis_dtype)

    if block_batch is None:
        bt = _pick_batch_block(B, Cin_p, Cout_p, Np, M2, cbytes, vmem_budget)
    else:
        bt = max(1, min(block_batch, B))
        while B % bt:
            bt -= 1

    # ---------------- Kernel 1: forward DFT ----------------
    # TODO(synk): if profiling shows exposed DMA at step boundaries, add
    # pipeline_mode=pl.Buffered(3) on the x / y BlockSpecs of K1/K3.
    cost_fwd = pl.CostEstimate(
        flops=2 * B * Cin_p * Np * M2,
        transcendentals=0,
        bytes_accessed=(B * Cin_p * Np * cbytes + Np * M2 * bbytes
                        + B * Cin_p * M2 * cbytes))
    xf = pl.pallas_call(
        _fwd_dft_kernel,
        out_shape=jax.ShapeDtypeStruct((B, Cin_p, M2), compute_dtype),
        grid_spec=pltpu.PrefetchScalarGridSpec(
            num_scalar_prefetch=0,
            grid=(B // bt,),
            in_specs=[
                pl.BlockSpec((bt, Cin_p, Np), lambda b: (b, 0, 0)),
                pl.BlockSpec((Np, M2), lambda b: (0, 0)),
            ],
            out_specs=pl.BlockSpec((bt, Cin_p, M2), lambda b: (b, 0, 0)),
        ),
        compiler_params=pltpu.CompilerParams(
            dimension_semantics=("parallel",),
            vmem_limit_bytes=vmem_limit),
        cost_estimate=cost_fwd,
    )(x_p, fb)

    # mode-major relayout of the (small) spectrum: (B, Cin, [Re|Im] modes)
    #  -> (Mp, B, [Re|Im] channels). XLA layout plumbing.
    x2 = jnp.transpose(xf.reshape(B, Cin_p, 2, Mp), (3, 0, 2, 1)) \
            .reshape(Mp, B, 2 * Cin_p)

    # ---------------- Kernel 2: per-mode channel mix ----------------
    mt = _pick_mode_block(Mp, B, 2 * Cin_p, 2 * Cout_p, cbytes, vmem_budget)
    cost_mix = pl.CostEstimate(
        flops=8 * Mp * B * Cin_p * Cout_p,
        transcendentals=0,
        bytes_accessed=(Mp * B * 2 * Cin_p * cbytes
                        + Mp * 4 * Cin_p * Cout_p * cbytes
                        + Mp * B * 2 * Cout_p * cbytes))
    y2 = pl.pallas_call(
        _mode_mix_kernel,
        out_shape=jax.ShapeDtypeStruct((Mp, B, 2 * Cout_p), compute_dtype),
        grid_spec=pltpu.PrefetchScalarGridSpec(
            num_scalar_prefetch=0,
            grid=(Mp // mt,),
            in_specs=[
                pl.BlockSpec((mt, B, 2 * Cin_p), lambda m: (m, 0, 0)),
                pl.BlockSpec((mt, 2 * Cin_p, 2 * Cout_p), lambda m: (m, 0, 0)),
            ],
            out_specs=pl.BlockSpec((mt, B, 2 * Cout_p), lambda m: (m, 0, 0)),
        ),
        compiler_params=pltpu.CompilerParams(
            dimension_semantics=("parallel",),
            vmem_limit_bytes=vmem_limit),
        cost_estimate=cost_mix,
    )(x2, w2)

    # back to batch-major (B, Cout, [Re|Im] modes) for the inverse DFT
    yc = jnp.transpose(y2.reshape(Mp, B, 2, Cout_p), (1, 3, 2, 0)) \
            .reshape(B, Cout_p, M2)

    # ---------------- Kernel 3: inverse DFT ----------------
    cost_inv = pl.CostEstimate(
        flops=2 * B * Cout_p * M2 * Np,
        transcendentals=0,
        bytes_accessed=(B * Cout_p * M2 * cbytes + M2 * Np * bbytes
                        + B * Cout_p * Np * 4))
    out = pl.pallas_call(
        _inv_dft_kernel,
        out_shape=jax.ShapeDtypeStruct((B, Cout_p, Np), jnp.float32),
        grid_spec=pltpu.PrefetchScalarGridSpec(
            num_scalar_prefetch=0,
            grid=(B // bt,),
            in_specs=[
                pl.BlockSpec((bt, Cout_p, M2), lambda b: (b, 0, 0)),
                pl.BlockSpec((M2, Np), lambda b: (0, 0)),
            ],
            out_specs=pl.BlockSpec((bt, Cout_p, Np), lambda b: (b, 0, 0)),
        ),
        compiler_params=pltpu.CompilerParams(
            dimension_semantics=("parallel",),
            vmem_limit_bytes=vmem_limit),
        cost_estimate=cost_inv,
    )(yc, ib)

    if (Cout_p, Np) != (Cout, N):
        out = out[:, :Cout, :N]
    return out


def spectral_conv1d_reference(x, weights):
    """Pure-JAX reference mirroring the PyTorch forward (real FFT)."""
    B, Cin, N = x.shape
    Cout, M = weights.shape[1], weights.shape[2]
    x_ft = jnp.fft.rfft(x)
    w = (weights[..., 0] + 1j * weights[..., 1]).astype(jnp.complex64)
    out_ft = jnp.zeros((B, Cout, N // 2 + 1), dtype=jnp.complex64)
    out_ft = out_ft.at[:, :, :M].set(jnp.einsum('bix,iox->box', x_ft[:, :, :M], w))
    return jnp.fft.irfft(out_ft, n=N)


if __name__ == "__main__":
    B, Cin, Cout, N, modes1 = 4, 8, 8, 256, 16

    key = jax.random.PRNGKey(0)
    kx, kw = jax.random.split(key)
    x = jax.random.normal(kx, (B, Cin, N), dtype=jnp.float32)

    # reset_parameters(): weights1 = scale * U(0, 1), scale = 1/(Cin*Cout)
    scale = 1.0 / (Cin * Cout)
    weights1 = scale * jax.random.uniform(kw, (Cin, Cout, modes1, 2),
                                          dtype=jnp.float32)

    ref = np.asarray(jax.block_until_ready(spectral_conv1d_reference(x, weights1)))

    # f32-operand path: tight tolerance vs. the FFT reference.
    run_f32 = jax.jit(functools.partial(spectral_conv1d, compute_dtype=jnp.float32))
    out_f32 = np.asarray(jax.block_until_ready(run_f32(x, weights1)))
    assert out_f32.shape == (B, Cout, N)
    assert np.allclose(out_f32, ref, rtol=1e-3, atol=1e-4), \
        np.max(np.abs(out_f32 - ref))

    # Default bf16-operand / f32-accumulation path (looser tolerance: bf16
    # rounding of inputs/bases gives ~0.5% relative error at this N).
    run_bf16 = jax.jit(spectral_conv1d)
    out_bf16 = np.asarray(jax.block_until_ready(run_bf16(x, weights1)))
    assert out_bf16.shape == (B, Cout, N)
    assert np.allclose(out_bf16, ref, rtol=5e-2, atol=5e-3), \
        np.max(np.abs(out_bf16 - ref))

    print("KERNEL_OK")
</pallas_src>

<mosaic_0001>
module attributes {stable_mosaic.version = 11 : i64} {
  func.func @_fwd_dft_kernel(%arg0: i32, %arg1: memref<1x8x256xf32, #tpu.memory_space<vmem>>, %arg2: memref<256x128xf32, #tpu.memory_space<vmem>>, %arg3: memref<1x8x128xf32, #tpu.memory_space<vmem>>) attributes {dimension_semantics = [#tpu.dimension_semantics<parallel>], iteration_bounds = array<i64: 4>, scalar_prefetch = 0 : i64, scratch_operands = 0 : i64, tpu.core_type = #tpu.core_type<tc>, window_params = [{transform_indices = @transform_0, window_bounds = array<i64: 1, 8, 256>}, {pipeline_mode = #tpu.pipeline_mode<synchronous>, transform_indices = @transform_1, window_bounds = array<i64: 256, 128>}, {transform_indices = @transform_2, window_bounds = array<i64: 1, 8, 128>}]} {
    %c0 = arith.constant 0 : index
    %c0_0 = arith.constant 0 : index
    %c0_1 = arith.constant 0 : index
    %0 = vector.load %arg1[%c0, %c0_0, %c0_1] : memref<1x8x256xf32, #tpu.memory_space<vmem>>, vector<1x8x256xf32>
    %1 = vector.shape_cast %0 : vector<1x8x256xf32> to vector<8x256xf32>
    %c0_2 = arith.constant 0 : index
    %c0_3 = arith.constant 0 : index
    %2 = vector.load %arg2[%c0_2, %c0_3] : memref<256x128xf32, #tpu.memory_space<vmem>>, vector<256x128xf32>
    %cst = arith.constant dense<0.000000e+00> : vector<8x128xf32>
    %3 = tpu.matmul %1, %2, %cst {dimension_numbers = #tpu.dot_dimension_numbers<[1], [0], [0], [1], [0, 0, 1, 1], [], []>} : vector<8x256xf32>, vector<256x128xf32>, vector<8x128xf32> -> vector<8x128xf32>
    %4 = vector.shape_cast %3 : vector<8x128xf32> to vector<1x8x128xf32>
    %c0_4 = arith.constant 0 : index
    %c0_5 = arith.constant 0 : index
    %c0_6 = arith.constant 0 : index
    %5 = vector.load %arg3[%c0_4, %c0_5, %c0_6] : memref<1x8x128xf32, #tpu.memory_space<vmem>>, vector<1x8x128xf32>
    tpu.vector_store %arg3[%c0_4, %c0_5, %c0_6], %4 {strides = array<i32>} : memref<1x8x128xf32, #tpu.memory_space<vmem>>, vector<1x8x128xf32>,
    return
  }
  func.func @transform_0(%arg0: i32) -> (i32, i32, i32) {
    %c0_i32 = arith.constant 0 : i32
    %c0_i32_0 = arith.constant 0 : i32
    %c0_i32_1 = arith.constant 0 : i32
    return %arg0, %c0_i32, %c0_i32_0 : i32, i32, i32
  }
  func.func @transform_1(%arg0: i32) -> (i32, i32) {
    %c0_i32 = arith.constant 0 : i32
    %c0_i32_0 = arith.constant 0 : i32
    %c0_i32_1 = arith.constant 0 : i32
    return %c0_i32, %c0_i32_0 : i32, i32
  }
  func.func @transform_2(%arg0: i32) -> (i32, i32, i32) {
    %c0_i32 = arith.constant 0 : i32
    %c0_i32_0 = arith.constant 0 : i32
    %c0_i32_1 = arith.constant 0 : i32
    return %arg0, %c0_i32, %c0_i32_0 : i32, i32, i32
  }
}

module attributes {stable_mosaic.version = 11 : i64} {
  func.func @_mode_mix_kernel(%arg0: i32, %arg1: memref<64x4x16xf32, #tpu.memory_space<vmem>>, %arg2: memref<64x16x16xf32, #tpu.memory_space<vmem>>, %arg3: memref<64x4x16xf32, #tpu.memory_space<vmem>>) attributes {dimension_semantics = [#tpu.dimension_semantics<parallel>], iteration_bounds = array<i64: 1>, scalar_prefetch = 0 : i64, scratch_operands = 0 : i64, tpu.core_type = #tpu.core_type<tc>, window_params = [{transform_indices = @transform_0, window_bounds = array<i64: 64, 4, 16>}, {transform_indices = @transform_1, window_bounds = array<i64: 64, 16, 16>}, {transform_indices = @transform_2, window_bounds = array<i64: 64, 4, 16>}]} {
    %c0 = arith.constant 0 : index
    %c0_0 = arith.constant 0 : index
    %c0_1 = arith.constant 0 : index
    %0 = vector.load %arg1[%c0, %c0_0, %c0_1] : memref<64x4x16xf32, #tpu.memory_space<vmem>>, vector<64x4x16xf32>
    %c0_2 = arith.constant 0 : index
    %c0_3 = arith.constant 0 : index
    %c0_4 = arith.constant 0 : index
    %1 = vector.load %arg2[%c0_2, %c0_3, %c0_4] : memref<64x16x16xf32, #tpu.memory_space<vmem>>, vector<64x16x16xf32>
    %cst = arith.constant dense<0.000000e+00> : vector<64x4x16xf32>
    %2 = tpu.matmul %0, %1, %cst {dimension_numbers = #tpu.dot_dimension_numbers<[2], [1], [1], [2], [0, 0, 0, 1, 1, 2], [0], [0]>} : vector<64x4x16xf32>, vector<64x16x16xf32>, vector<64x4x16xf32> -> vector<64x4x16xf32>
    %c0_5 = arith.constant 0 : index
    %c0_6 = arith.constant 0 : index
    %c0_7 = arith.constant 0 : index
    %3 = vector.load %arg3[%c0_5, %c0_6, %c0_7] : memref<64x4x16xf32, #tpu.memory_space<vmem>>, vector<64x4x16xf32>
    tpu.vector_store %arg3[%c0_5, %c0_6, %c0_7], %2 {strides = array<i32>} : memref<64x4x16xf32, #tpu.memory_space<vmem>>, vector<64x4x16xf32>,
    return
  }
  func.func @transform_0(%arg0: i32) -> (i32, i32, i32) {
    %c0_i32 = arith.constant 0 : i32
    %c0_i32_0 = arith.constant 0 : i32
    %c0_i32_1 = arith.constant 0 : i32
    return %arg0, %c0_i32, %c0_i32_0 : i32, i32, i32
  }
  func.func @transform_1(%arg0: i32) -> (i32, i32, i32) {
    %c0_i32 = arith.constant 0 : i32
    %c0_i32_0 = arith.constant 0 : i32
    %c0_i32_1 = arith.constant 0 : i32
    return %arg0, %c0_i32, %c0_i32_0 : i32, i32, i32
  }
  func.func @transform_2(%arg0: i32) -> (i32, i32, i32) {
    %c0_i32 = arith.constant 0 : i32
    %c0_i32_0 = arith.constant 0 : i32
    %c0_i32_1 = arith.constant 0 : i32
    return %arg0, %c0_i32, %c0_i32_0 : i32, i32, i32
  }
}

module attributes {stable_mosaic.version = 11 : i64} {
  func.func @_inv_dft_kernel(%arg0: i32, %arg1: memref<1x8x128xf32, #tpu.memory_space<vmem>>, %arg2: memref<128x256xf32, #tpu.memory_space<vmem>>, %arg3: memref<1x8x256xf32, #tpu.memory_space<vmem>>) attributes {dimension_semantics = [#tpu.dimension_semantics<parallel>], iteration_bounds = array<i64: 4>, scalar_prefetch = 0 : i64, scratch_operands = 0 : i64, tpu.core_type = #tpu.core_type<tc>, window_params = [{transform_indices = @transform_0, window_bounds = array<i64: 1, 8, 128>}, {pipeline_mode = #tpu.pipeline_mode<synchronous>, transform_indices = @transform_1, window_bounds = array<i64: 128, 256>}, {transform_indices = @transform_2, window_bounds = array<i64: 1, 8, 256>}]} {
    %c0 = arith.constant 0 : index
    %c0_0 = arith.constant 0 : index
    %c0_1 = arith.constant 0 : index
    %0 = vector.load %arg1[%c0, %c0_0, %c0_1] : memref<1x8x128xf32, #tpu.memory_space<vmem>>, vector<1x8x128xf32>
    %1 = vector.shape_cast %0 : vector<1x8x128xf32> to vector<8x128xf32>
    %c0_2 = arith.constant 0 : index
    %c0_3 = arith.constant 0 : index
    %2 = vector.load %arg2[%c0_2, %c0_3] : memref<128x256xf32, #tpu.memory_space<vmem>>, vector<128x256xf32>
    %cst = arith.constant dense<0.000000e+00> : vector<8x256xf32>
    %3 = tpu.matmul %1, %2, %cst {dimension_numbers = #tpu.dot_dimension_numbers<[1], [0], [0], [1], [0, 0, 1, 1], [], []>} : vector<8x128xf32>, vector<128x256xf32>, vector<8x256xf32> -> vector<8x256xf32>
    %4 = vector.shape_cast %3 : vector<8x256xf32> to vector<1x8x256xf32>
    %c0_4 = arith.constant 0 : index
    %c0_5 = arith.constant 0 : index
    %c0_6 = arith.constant 0 : index
    %5 = vector.load %arg3[%c0_4, %c0_5, %c0_6] : memref<1x8x256xf32, #tpu.memory_space<vmem>>, vector<1x8x256xf32>
    tpu.vector_store %arg3[%c0_4, %c0_5, %c0_6], %4 {strides = array<i32>} : memref<1x8x256xf32, #tpu.memory_space<vmem>>, vector<1x8x256xf32>,
    return
  }
  func.func @transform_0(%arg0: i32) -> (i32, i32, i32) {
    %c0_i32 = arith.constant 0 : i32
    %c0_i32_0 = arith.constant 0 : i32
    %c0_i32_1 = arith.constant 0 : i32
    return %arg0, %c0_i32, %c0_i32_0 : i32, i32, i32
  }
  func.func @transform_1(%arg0: i32) -> (i32, i32) {
    %c0_i32 = arith.constant 0 : i32
    %c0_i32_0 = arith.constant 0 : i32
    %c0_i32_1 = arith.constant 0 : i32
    return %c0_i32, %c0_i32_0 : i32, i32
  }
  func.func @transform_2(%arg0: i32) -> (i32, i32, i32) {
    %c0_i32 = arith.constant 0 : i32
    %c0_i32_0 = arith.constant 0 : i32
    %c0_i32_1 = arith.constant 0 : i32
    return %arg0, %c0_i32, %c0_i32_0 : i32, i32, i32
  }
}

</mosaic_0001>

<bundles_post_ra>
// kernel: spectral_conv1d.3
= control target key start
LH: loop header
LB: loop body
LE: loop exit
PB: predicated region body
PF: predicated region fallthrough
CT: control target
= control target key end

     0   :  { %7 = vsyncpa [#allocation3], 0  ;;  %s751_s0 = inlined_call_operand.hbm [shape: f32[4,8,256], index: 0, kind: input, shape index: {}]   ;;  %s752_s1 = inlined_call_operand.hbm [shape: f32[256,128], index: 1, kind: input, shape index: {}]   ;;  %s753_s2 = inlined_call_operand.vmem [shape: f32[4,8,128], index: 2, kind: output, shape index: {}]  }
   0x1   :  { %9 = vsyncpa [#allocation3 + $0x1], 0 }
   0x2   :  { %10 = vsyncpa [#allocation5], 0  ;;  %s605_s9 = smov 0   ;;  %s607_s10 = smov 0  }
   0x3   :  { %s609_s11 = smov 0   ;;  %s611_s12 = smov 0  }
   0x4 LB: > { %s624_s13 = sadd.s32 4294967295, %s584_s12   ;;  %p36_p0 = scmp.ne.s32.totalorder %s576_s10, %s572_s9  ;;  %s584_s12 = sphi %s611_s12, %s768_s12   ;;  %s580_s11 = sphi %s609_s11, %s767_s11   ;;  %s576_s10 = sphi %s607_s10, %s766_s10   ;;  %s572_s9 = sphi %s605_s9, %s765_s9  }
   0x5   : > { %p754_p1 = scmp.eq.s32.totalorder %s624_s13, 0  ;;  %p356_p2 = scmp.ge.s32.totalorder %s584_s12, 1 }
   0x6   : > { %p94_p3 = scmp.lt.s32.totalorder %s584_s12, 5  ;;  %s586_s16 = smov [#allocation4]  }
   0x7   : > { %p632_p4 = por %p754_p1, %p36_p0  ;;  %s106_s17 = sshll.u32 %s586_s16, 4  ;;  %s107_s17 = int_to_ptr.vmem [resolvable:$true] %s106_s17 }
   0x8   : > { %p636_p5 = pnand %p356_p2, %p94_p3  ;;  %s649_s19 = sadd.s32 1, %s584_s12  }
   0x9   : > { %s757_s14 = scalar_select %p632_p4, 1, 0 }
   0xa   : > { %s758_s15 = scalar_select %p636_p5, 1, 0 }
   0xb   : > { %p442_p6 = pneg %p636_p5  ;;  %s23_s20 = sadd.s32 1, %s580_s11 }
   0xc   : > { %s20_s21 = ssub.s32 %s584_s12, %s649_s19  ;;  %s488_s24 = scalar_lea.hbm %s752_s1, 4096 }
   0xd   : > { %p644_p7 = pnand %p442_p6, %p754_p1  ;;  %p489_p8 = scmp.ne.s32.totalorder %s752_s1, %s488_s24 }
   0xe   : > { %p495_p12 = scmp.lt.u32.totalorder %s488_s24, %s752_s1 }
   0xf   : > { %p490_p9 = pneg %p644_p7 }
  0x11   : > { %p491_p10 = pnand %p490_p9, %p489_p8 }
  0x13   : > { %p492_p11 = pneg %p491_p10 }
  0x15   : > { %p497_p13 = pnand %p495_p12, %p492_p11 }
  0x17   : > { %500 = shalt.err (!%p497_p13)
}
  0x18   : > { %s501_s29 = scalar_lea.vmem %s107_s17, 4096  ;;  %p509_p6 = scmp.lt.s32.totalorder %s107_s17, %s107_s17 }
  0x19   : > { %p502_p0 = scmp.ne.s32.totalorder %s107_s17, %s501_s29  ;;  %p510_p1 = scmp.lt.s32.totalorder %s501_s29, %s501_s29 }
  0x1b   : > { %p504_p2 = pnand %p502_p0, %p490_p9  ;;  %p511_p4 = por %p510_p1, %p509_p6 }
  0x1d   : > { %p505_p3 = pneg %p504_p2 }
  0x1f   : > { %p512_p5 = pnand %p511_p4, %p505_p3 }
  0x21   : > { %515 = shalt.err (!%p512_p5)
}
  0x22   : > { %s587_s30 = smov 128   ;;  %s588_s3 = smov 8  }
  0x23   : > { %445 = dma.hbm_to_vmem [thread:$0]  (!%p644_p7), %s752_s1, 4096, %s107_s17, [#allocation5], %s587_s30, %s587_s30, %s588_s3  }
  0x24   : > { %p21_p8 = scmp.eq.s32.totalorder %s20_s21, 0  ;;  %p30_p9 = scmp.ne.s32.totalorder %s580_s11, %s576_s10 }
  0x25   : > { %p31_p1 = scmp.eq.s32.totalorder %s584_s12, 0  ;;  %p451_p4 = scmp.lt.s32.totalorder %s584_s12, 4 }
  0x26   : > { %s675_s6 = scalar_select %p21_p8, %s580_s11, %s23_s20  }
  0x27   : > { %p32_p5 = por %p31_p1, %p30_p9  ;;  %s120_s7 = sand.u32 1, %s580_s11  }
  0x28   : > { %s359_s8 = sshll.u32 %s120_s7, 4  ;;  %s368_s9 = sshll.u32 %s584_s12, 8 }
  0x29   : > { %s682_s23 = scalar_lea.hbm %s751_s0, %s368_s9  ;;  %s124_s17 = scalar_lea.vmem [#allocation2], %s359_s8 }
  0x2a   : > { %s132_s18 = sshll.u32 %s124_s17, 4  ;;  %p686_p7 = pnand %p451_p4, %p32_p5  ;;  %s684_s18 = int_to_ptr.vmem [resolvable:$true] %s132_s18 }
  0x2b   : > { %s121_s12 = scalar_lea.sflag [#allocation3], %s120_s7  ;;  %s516_s21 = scalar_lea.hbm %s682_s23, 256 }
  0x2c   : > { %p517_p10 = scmp.ne.s32.totalorder %s682_s23, %s516_s21  ;;  %p518_p11 = pneg %p686_p7 }
  0x2d   : > { %s521_s26 = scalar_lea.hbm %s751_s0, 1024  ;;  %p522_p0 = scmp.lt.u32.totalorder %s682_s23, %s751_s0 }
  0x2e   : > { %p519_p12 = pnand %p518_p11, %p517_p10  ;;  %p523_p2 = scmp.lt.u32.totalorder %s521_s26, %s516_s21 }
  0x2f   : > { %p525_p6 = scmp.lt.u32.totalorder %s516_s21, %s682_s23 }
  0x30   : > { %p520_p13 = pneg %p519_p12  ;;  %p524_p3 = por %p523_p2, %p522_p0 }
  0x32   : > { %p526_p8 = por %p525_p6, %p524_p3 }
  0x34   : > { %p527_p9 = pnand %p526_p8, %p520_p13 }
  0x36   : > { %530 = shalt.err (!%p527_p9)
}
  0x37   : > { %s531_s29 = scalar_lea.vmem %s684_s18, 256  ;;  %s589_s30 = smov [#allocation2]  }
  0x38   : > { %p532_p1 = scmp.ne.s32.totalorder %s684_s18, %s531_s29  ;;  %s536_s3 = sshll.u32 %s589_s30, 4  ;;  %s537_s3 = int_to_ptr.vmem [resolvable:$false] %s536_s3 }
  0x39   : > { %s538_s4 = scalar_lea.vmem %s537_s3, 512  ;;  %p539_p10 = scmp.lt.s32.totalorder %s684_s18, %s537_s3 }
  0x3a   : > { %p534_p4 = pnand %p532_p1, %p518_p11  ;;  %p540_p12 = scmp.lt.s32.totalorder %s538_s4, %s531_s29 }
  0x3c   : > { %p535_p5 = pneg %p534_p4  ;;  %p541_p0 = por %p540_p12, %p539_p10 }
  0x3e   : > { %p542_p2 = pnand %p541_p0, %p535_p5 }
  0x40   : > { %545 = shalt.err (!%p542_p2)
}
  0x41   : > { %449 = dma.hbm_to_vmem [thread:$0]  (!%p686_p7), %s682_s23, 256, %s684_s18, %s121_s12  }
  0x42   : > { %p761_p13 = scmp.ne.s32.totalorder %s758_s15, 0 }
  0x43   : > { %s143_s5 = sand.u32 (!%p761_p13), 1, %s576_s10   ;;  %p762_p11 = scmp.ne.s32.totalorder (!%p761_p13), %s757_s14, 0 }
  0x44   : > { %141 = sbr.rel (%p761_p13) target bundleno = 330 (0x14a), region = 28  ;;  %s718_s7 = sshll.u32 (!%p761_p13), %s143_s5, 4 }
  0x45   : > { %s144_s8 = scalar_lea.sflag (!%p761_p13), [#allocation3], %s143_s5  ;;  %s147_s9 = scalar_lea.vmem (!%p761_p13), [#allocation2], %s718_s7 }
  0x4b   : > { %563 = dma.done.wait (%p762_p11), %s144_s8, 256  }
  0x4c   : > { %565 = vsyncadd (%p762_p11), %s144_s8, 4294967040  ;;  %p763_p3 = scmp.eq.s32.totalorder %s624_s13, 0 }
  0x4e   : > { %567 = dma.done.wait (%p763_p3), [#allocation5], 4096   ;;  %p764_p7 = pmov %p763_p3 }
  0x4f   : > { %v193_v0 = vld [vmem:[#allocation4 + $0x80] sm:$0xff]  ;;  %v194_v1 = vld [vmem:[#allocation4 + $0x88] sm:$0xff]  ;;  %v195_v5 = vld [vmem:[#allocation4 + $0x90] sm:$0xff]  ;;  %p171_p6 = scmp.lt.s32.totalorder %s624_s13, 3 }
  0x50   : > { %569 = vsyncadd (%p764_p7), [#allocation5], 4294963200  ;;  %v177_v2 = vld [vmem:[#allocation4] sm:$0xff]  ;;  %v404_v3 = vpack.c.bf16 %v194_v1, %v193_v0  ;;  %v178_v4 = vld [vmem:[#allocation4 + $0x8] sm:$0xff] }
  0x51   : > { %v196_v6 = vld [vmem:[#allocation4 + $0x98] sm:$0xff]  ;;  %v406_v7 = vpack.c.bf16 %v178_v4, %v177_v2  ;;  %v179_v9 = vld [vmem:[#allocation4 + $0x10] sm:$0xff]  ;;  %v197_v11 = vld [vmem:[#allocation4 + $0xa0] sm:$0xff]  ;;  %s770_s13 = smov (!%p171_p6, %s624_s13), 3 }
  0x52   : > { %v408_v8 = vpack.c.bf16 %v196_v6, %v195_v5  ;;  %v180_v10 = vld [vmem:[#allocation4 + $0x18] sm:$0xff]  ;;  %405 = vmatprep.subr.bf16.mxu0 %v404_v3  ;;  %v198_v12 = vld [vmem:[#allocation4 + $0xa8] sm:$0xff]  ;;  %v181_v15 = vld [vmem:[#allocation4 + $0x20] sm:$0xff]  ;;  %s365_s14 = sshll.u32 %s770_s13, 3 }
  0x53   : > { %407 = vmatpush3.bf16.msra.mxu0 %v406_v7  ;;  %v410_v13 = vpack.c.bf16 %v180_v10, %v179_v9  ;;  %v412_v14 = vpack.c.bf16 %v198_v12, %v197_v11  ;;  %v182_v16 = vld [vmem:[#allocation4 + $0x28] sm:$0xff]  ;;  %v199_v17 = vld [vmem:[#allocation4 + $0xb0] sm:$0xff]  ;;  %v200_v18 = vld [vmem:[#allocation4 + $0xb8] sm:$0xff]  ;;  %s174_s22 = scalar_lea.vmem %s753_s2, %s365_s14 }
  0x54   : > { %409 = vmatprep.subr.bf16.mxu0 %v408_v8  ;;  %v414_v19 = vpack.c.bf16 %v182_v16, %v181_v15  ;;  %v416_v20 = vpack.c.bf16 %v200_v18, %v199_v17  ;;  %v183_v21 = vld [vmem:[#allocation4 + $0x30] sm:$0xff]  ;;  %v184_v22 = vld [vmem:[#allocation4 + $0x38] sm:$0xff]  ;;  %v201_v23 = vld [vmem:[#allocation4 + $0xc0] sm:$0xff] }
  0x55   : > { %v202_v24 = vld [vmem:[#allocation4 + $0xc8] sm:$0xff]  ;;  %v418_v26 = vpack.c.bf16 %v184_v22, %v183_v21  ;;  %v185_v28 = vld [vmem:[#allocation4 + $0x40] sm:$0xff]  ;;  %v203_v30 = vld [vmem:[#allocation4 + $0xd0] sm:$0xff] }
  0x56   : > { %v176_v25 = vld [vmem:[%s147_s9 + $0x8] sm:$0xff]  ;;  %v420_v27 = vpack.c.bf16 %v202_v24, %v201_v23  ;;  %v187_v34 = vld [vmem:[#allocation4 + $0x50] sm:$0xff]  ;;  %v205_v36 = vld [vmem:[#allocation4 + $0xe0] sm:$0xff] }
  0x57   : > { %411 = vmatpush3.bf16.msra.mxu0 %v410_v13  ;;  %273 = vmatprep.mubr.f32.mxu0 %v176_v25  ;;  %v186_v29 = vld [vmem:[#allocation4 + $0x48] sm:$0xff]  ;;  %v204_v31 = vld [vmem:[#allocation4 + $0xd8] sm:$0xff]  ;;  %v189_v40 = vld [vmem:[#allocation4 + $0x60] sm:$0xff] }
  0x58   : > { %413 = vmatprep.subr.bf16.mxu0 %v412_v14  ;;  %v422_v32 = vpack.c.bf16 %v186_v29, %v185_v28  ;;  %v424_v33 = vpack.c.bf16 %v204_v31, %v203_v30  ;;  %v188_v35 = vld [vmem:[#allocation4 + $0x58] sm:$0xff]  ;;  %v206_v37 = vld [vmem:[#allocation4 + $0xe8] sm:$0xff]  ;;  %v207_v42 = vld [vmem:[#allocation4 + $0xf0] sm:$0xff] }
  0x59   : > { %v426_v38 = vpack.c.bf16 %v188_v35, %v187_v34  ;;  %v428_v39 = vpack.c.bf16 %v206_v37, %v205_v36  ;;  %v190_v41 = vld [vmem:[#allocation4 + $0x68] sm:$0xff]  ;;  %v208_v43 = vld [vmem:[#allocation4 + $0xf8] sm:$0xff]  ;;  %v191_v46 = vld [vmem:[#allocation4 + $0x70] sm:$0xff] }
  0x5a   : > { %v430_v44 = vpack.c.bf16 %v190_v41, %v189_v40  ;;  %v432_v45 = vpack.c.bf16 %v208_v43, %v207_v42  ;;  %v192_v47 = vld [vmem:[#allocation4 + $0x78] sm:$0xff]  ;;  %v175_v49 = vld [vmem:[%s147_s9] sm:$0xff] }
  0x5b   : > { %415 = vmatpush3.bf16.msra.mxu0 %v414_v19  ;;  %v434_v48 = vpack.c.bf16 %v192_v47, %v191_v46 }
  0x5c   : > { %417 = vmatprep.subr.bf16.mxu0 %v416_v20 }
  0x5f   : > { %419 = vmatpush3.bf16.msra.mxu0 %v418_v26 }
  0x60   : > { %421 = vmatprep.subr.bf16.mxu0 %v420_v27 }
  0x63   : > { %423 = vmatpush3.bf16.msra.mxu0 %v422_v32 }
  0x64   : > { %425 = vmatprep.subr.bf16.mxu0 %v424_v33 }
  0x67   : > { %427 = vmatpush3.bf16.msra.mxu0 %v426_v38 }
  0x68   : > { %429 = vmatprep.subr.bf16.mxu0 %v428_v39 }
  0x6b   : > { %431 = vmatpush3.bf16.msra.mxu0 %v430_v44 }
  0x6c   : > { %433 = vmatprep.subr.bf16.mxu0 %v432_v45 }
  0x6f   : > { %435 = vmatpush3.bf16.msra.mxu0 %v434_v48 }
  0x72   : > { %274 = vmatmul.mubr.f32.vlgmr.msra.gmra.mrb[0].mxu0 %v175_v49 }
 0x145   : > { %v401_v50 = vpop.f32.mrb[0].mxu0 }
 0x146   : > { %v402_v51 = vpop.f32.mrb[1].mxu0 }
 0x147   : > { %v403_v52 = vadd.f32 %v402_v51, %v401_v50 }
 0x149   : > { %279 = vst [vmem:[%s174_s22] sm:$0xff] %v403_v52 }
 0x14a PF: > { %p13_p8 = scmp.ge.s32.totalorder %s649_s19, 6   ;;  %s765_s9 = smov %s576_s10 }
 0x14b   : > { %s766_s10 = smov %s580_s11  ;;  %s767_s11 = smov %s675_s6 }
 0x14c   : > { %s768_s12 = smov %s649_s19  ;;  %15 = sbr.rel (!%p13_p8) target bundleno = 4 (0x4), region = 72 }
 0x153   :  { %299 = vsyncpa [#allocation3], 1 }
 0x154   :  { %301 = vsyncpa [#allocation3 + $0x1], 1 }
 0x155   :  { %302 = vsyncpa [#allocation5], 1 }

// kernel: spectral_conv1d.5
= control target key start
LH: loop header
LB: loop body
LE: loop exit
PB: predicated region body
PF: predicated region fallthrough
CT: control target
= control target key end

     0   :  { %7 = vsyncpa [#allocation3], 0  ;;  %s680_s0 = inlined_call_operand.vmem [shape: f32[4,8,128], index: 0, kind: input, shape index: {}]   ;;  %s681_s1 = inlined_call_operand.vmem [shape: f32[128,256], index: 1, kind: input, shape index: {}]   ;;  %s682_s2 = inlined_call_operand.hbm [shape: f32[4,8,256], index: 2, kind: output, shape index: {}]  }
   0x1   :  { %9 = vsyncpa [#allocation3 + $0x1], 0  ;;  %s484_s9 = smov 0   ;;  %s486_s10 = smov 0  }
   0x2   :  { %s488_s11 = smov 0   ;;  %s490_s12 = smov 0  }
   0x3 LB: > { %s505_s13 = sadd.s32 4294967295, %s465_s12   ;;  %s319_s14 = sadd.s32 4294967294, %s465_s12   ;;  %s465_s12 = sphi %s490_s12, %s688_s12   ;;  %s461_s11 = sphi %s488_s11, %s687_s11   ;;  %s457_s10 = sphi %s486_s10, %s686_s10   ;;  %s453_s9 = sphi %s484_s9, %s685_s9  }
   0x4   : > { %s509_s15 = sadd.s32 1, %s465_s12   ;;  %s69_s16 = sadd.s32 1, %s461_s11 }
   0x5   : > { %s66_s17 = ssub.s32 %s465_s12, %s509_s15  ;;  %p79_p0 = scmp.ne.s32.totalorder %s461_s11, %s457_s10 }
   0x6   : > { %p67_p1 = scmp.eq.s32.totalorder %s66_s17, 0  ;;  %p80_p2 = scmp.eq.s32.totalorder %s505_s13, 3 }
   0x7   : > { %p85_p3 = scmp.ne.s32.totalorder %s457_s10, %s453_s9  ;;  %p86_p4 = scmp.eq.s32.totalorder %s319_s14, 3 }
   0x8   : > { %s520_s18 = scalar_select %p67_p1, %s461_s11, %s69_s16  }
   0x9   : > { %p522_p5 = por %p80_p2, %p79_p0  ;;  %p526_p6 = por %p86_p4, %p85_p3 }
   0xa   : > { %p322_p7 = scmp.ge.s32.totalorder %s465_s12, 1  ;;  %p114_p8 = scmp.lt.s32.totalorder %s465_s12, 5 }
   0xc   : > { %p115_p9 = pnand %p322_p7, %p114_p8 }
   0xd   : > { %v141_v0 = vld [vmem:[%s681_s1 + $0x8] sm:$0xff] (!%p115_p9)  ;;  %v143_v1 = vld [vmem:[%s681_s1 + $0x18] sm:$0xff] (!%p115_p9)  ;;  %v140_v2 = vld [vmem:[%s681_s1] sm:$0xff] (!%p115_p9)  ;;  %v467_v7 = vmov (!%p115_p9), 0.0   ;;  %p135_p10 = scmp.lt.s32.totalorder (!%p115_p9), %s505_s13, 3  ;;  %s132_s5 = sand.u32 (!%p115_p9), 1, %s457_s10  }
   0xe   : > { %118 = sbr.rel (%p115_p9) target bundleno = 275 (0x113), region = 28  ;;  %v331_v3 = vpack.c.bf16 (!%p115_p9), %v143_v1, %v141_v0  ;;  %v142_v4 = vld [vmem:[%s681_s1 + $0x10] sm:$0xff] (!%p115_p9)  ;;  %v145_v5 = vld [vmem:[%s681_s1 + $0x28] sm:$0xff] (!%p115_p9)  ;;  %v147_v6 = vld [vmem:[%s681_s1 + $0x38] sm:$0xff] (!%p115_p9)  ;;  %236 = vmatprep.mubr.f32.mxu0 (!%p115_p9), %v467_v7  ;;  %s323_s6 = sshll.u32 (!%p115_p9), %s132_s5, 4 }
   0xf   : > { %v333_v8 = vpack.c.bf16 (!%p115_p9), %v142_v4, %v140_v2  ;;  %v335_v9 = vpack.c.bf16 (!%p115_p9), %v147_v6, %v145_v5  ;;  %v144_v10 = vld [vmem:[%s681_s1 + $0x20] sm:$0xff] (!%p115_p9)  ;;  %v146_v11 = vld [vmem:[%s681_s1 + $0x30] sm:$0xff] (!%p115_p9)  ;;  %v149_v12 = vld [vmem:[%s681_s1 + $0x48] sm:$0xff] (!%p115_p9)  ;;  %s134_s7 = scalar_lea.vmem (!%p115_p9), [#allocation2], %s323_s6  ;;  %s330_s14 = sshll.u32 (!%p115_p9), %s505_s13, 8 }
  0x10   : > { %332 = vmatprep.subr.bf16.mxu0 (!%p115_p9), %v331_v3  ;;  %v151_v13 = vld [vmem:[%s681_s1 + $0x58] sm:$0xff] (!%p115_p9)  ;;  %v337_v14 = vpack.c.bf16 (!%p115_p9), %v146_v11, %v144_v10  ;;  %v148_v16 = vld [vmem:[%s681_s1 + $0x40] sm:$0xff] (!%p115_p9)  ;;  %v150_v17 = vld [vmem:[%s681_s1 + $0x50] sm:$0xff] (!%p115_p9)  ;;  %s260_s8 = sshll.u32 (!%p115_p9), %s134_s7, 4  ;;  %s640_s21 = scalar_lea.hbm (!%p115_p9), %s682_s2, %s330_s14  ;;  %s635_s8 = int_to_ptr.vmem [resolvable:$true] %s260_s8 }
  0x11   : > { %334 = vmatpush1.bf16.msra.mxu0 (!%p115_p9), %v333_v8  ;;  %v339_v15 = vpack.c.bf16 (!%p115_p9), %v151_v13, %v149_v12  ;;  %v153_v18 = vld [vmem:[%s681_s1 + $0x68] sm:$0xff] (!%p115_p9)  ;;  %v155_v19 = vld [vmem:[%s681_s1 + $0x78] sm:$0xff] (!%p115_p9)  ;;  %v341_v20 = vpack.c.bf16 (!%p115_p9), %v150_v17, %v148_v16  ;;  %v152_v22 = vld [vmem:[%s681_s1 + $0x60] sm:$0xff] (!%p115_p9)  ;;  %s246_s22 = scalar_lea.sflag (!%p115_p9), [#allocation3], %s132_s5  ;;  %s403_s23 = scalar_lea.vmem (!%p115_p9), %s635_s8, 256 }
  0x12   : > { %336 = vmatprep.subr.bf16.mxu0 (!%p115_p9), %v335_v9  ;;  %v343_v21 = vpack.c.bf16 (!%p115_p9), %v155_v19, %v153_v18  ;;  %v154_v23 = vld [vmem:[%s681_s1 + $0x70] sm:$0xff] (!%p115_p9)  ;;  %v157_v24 = vld [vmem:[%s681_s1 + $0x88] sm:$0xff] (!%p115_p9)  ;;  %v159_v25 = vld [vmem:[%s681_s1 + $0x98] sm:$0xff] (!%p115_p9)  ;;  %p404_p11 = scmp.ne.s32.totalorder (!%p115_p9), %s635_s8, %s403_s23 }
  0x13   : > { %v345_v26 = vpack.c.bf16 (!%p115_p9), %v154_v23, %v152_v22  ;;  %v347_v27 = vpack.c.bf16 (!%p115_p9), %v159_v25, %v157_v24  ;;  %v156_v28 = vld [vmem:[%s681_s1 + $0x80] sm:$0xff] (!%p115_p9)  ;;  %v158_v29 = vld [vmem:[%s681_s1 + $0x90] sm:$0xff] (!%p115_p9)  ;;  %v161_v30 = vld [vmem:[%s681_s1 + $0xa8] sm:$0xff] (!%p115_p9) }
  0x14   : > { %v163_v31 = vld [vmem:[%s681_s1 + $0xb8] sm:$0xff] (!%p115_p9)  ;;  %v349_v32 = vpack.c.bf16 (!%p115_p9), %v158_v29, %v156_v28  ;;  %v160_v34 = vld [vmem:[%s681_s1 + $0xa0] sm:$0xff] (!%p115_p9)  ;;  %v162_v35 = vld [vmem:[%s681_s1 + $0xb0] sm:$0xff] (!%p115_p9)  ;;  %p405_p12 = pnand (!%p115_p9), %p404_p11, %p522_p5 }
  0x15   : > { %338 = vmatpush1.bf16.msra.mxu0 %v337_v14  ;;  %v351_v33 = vpack.c.bf16 %v163_v31, %v161_v30  ;;  %v165_v36 = vld [vmem:[%s681_s1 + $0xc8] sm:$0xff]  ;;  %v167_v37 = vld [vmem:[%s681_s1 + $0xd8] sm:$0xff]  ;;  %v353_v38 = vpack.c.bf16 %v162_v35, %v160_v34  ;;  %v164_v40 = vld [vmem:[%s681_s1 + $0xc0] sm:$0xff]  ;;  %s136_s24 = scalar_select %p135_p10, %s505_s13, 3 }
  0x16   : > { %340 = vmatprep.subr.bf16.mxu0 %v339_v15  ;;  %v355_v39 = vpack.c.bf16 %v167_v37, %v165_v36  ;;  %v166_v41 = vld [vmem:[%s681_s1 + $0xd0] sm:$0xff]  ;;  %v169_v42 = vld [vmem:[%s681_s1 + $0xe8] sm:$0xff]  ;;  %v171_v43 = vld [vmem:[%s681_s1 + $0xf8] sm:$0xff]  ;;  %p406_p13 = pneg %p405_p12  ;;  %s468_s13 = smov [#allocation2]  }
  0x17   : > { %v357_v44 = vpack.c.bf16 %v166_v41, %v164_v40  ;;  %v359_v45 = vpack.c.bf16 %v171_v43, %v169_v42  ;;  %v168_v46 = vld [vmem:[%s681_s1 + $0xe0] sm:$0xff]  ;;  %v170_v47 = vld [vmem:[%s681_s1 + $0xf0] sm:$0xff]  ;;  %s324_s29 = sshll.u32 %s136_s24, 3  ;;  %s407_s24 = sshll.u32 %s468_s13, 4  ;;  %s408_s24 = int_to_ptr.vmem [resolvable:$false] %s407_s24 }
  0x18   : > { %v361_v48 = vpack.c.bf16 %v170_v47, %v168_v46  ;;  %s138_s4 = scalar_lea.vmem %s680_s0, %s324_s29  ;;  %s409_s25 = scalar_lea.vmem %s408_s24, 512 }
  0x19   : > { %342 = vmatpush1.bf16.msra.mxu0 %v341_v20  ;;  %v139_v49 = vld [vmem:[%s138_s4] sm:$0xff]  ;;  %p410_p0 = scmp.lt.s32.totalorder %s635_s8, %s408_s24  ;;  %p411_p1 = scmp.lt.s32.totalorder %s409_s25, %s403_s23 }
  0x1a   : > { %344 = vmatprep.subr.bf16.mxu0 %v343_v21 }
  0x1b   : > { %p412_p2 = por %p411_p1, %p410_p0 }
  0x1d   : > { %346 = vmatpush1.bf16.msra.mxu0 %v345_v26  ;;  %p413_p3 = pnand %p412_p2, %p406_p13 }
  0x1e   : > { %348 = vmatprep.subr.bf16.mxu0 %v347_v27 }
  0x21   : > { %350 = vmatpush1.bf16.msra.mxu0 %v349_v32 }
  0x22   : > { %352 = vmatprep.subr.bf16.mxu0 %v351_v33 }
  0x25   : > { %354 = vmatpush1.bf16.msra.mxu0 %v353_v38 }
  0x26   : > { %356 = vmatprep.subr.bf16.mxu0 %v355_v39 }
  0x29   : > { %358 = vmatpush1.bf16.msra.mxu0 %v357_v44 }
  0x2a   : > { %360 = vmatprep.subr.bf16.mxu0 %v359_v45 }
  0x2d   : > { %362 = vmatpush1.bf16.msra.mxu0 %v361_v48 }
  0x30   : > { %237 = vmatmul.mubr.f32.vlgmr.msra.gmra.mrb[0].mxu0 %v139_v49 }
 0x103   : > { %v238_v50 = vpop.f32.mrb[0].mxu0 }
 0x104   : > { %243 = vst [vmem:[%s134_s7] sm:$0xff] %v238_v50  ;;  %v240_v51 = vpop.f32.mrb[1].mxu0 }
 0x105   : > { %244 = vst [vmem:[%s134_s7 + $0x8] sm:$0xff] %v240_v51 }
 0x106   : > { %416 = shalt.err (!%p413_p3)
}
 0x107   : > { %s417_s26 = scalar_lea.hbm %s640_s21, 256  ;;  %s421_s29 = scalar_lea.hbm %s682_s2, 1024 }
 0x108   : > { %p418_p4 = scmp.ne.s32.totalorder %s640_s21, %s417_s26  ;;  %p422_p9 = scmp.lt.u32.totalorder %s640_s21, %s682_s2 }
 0x109   : > { %p423_p10 = scmp.lt.u32.totalorder %s421_s29, %s417_s26  ;;  %p425_p12 = scmp.lt.u32.totalorder %s417_s26, %s640_s21 }
 0x10a   : > { %p419_p7 = pnand %p418_p4, %p522_p5 }
 0x10b   : > { %p424_p11 = por %p423_p10, %p422_p9 }
 0x10c   : > { %p420_p8 = pneg %p419_p7 }
 0x10d   : > { %p426_p13 = por %p425_p12, %p424_p11 }
 0x10f   : > { %p427_p0 = pnand %p426_p13, %p420_p8 }
 0x111   : > { %430 = shalt.err (!%p427_p0)
}
 0x112   : > { %363 = dma.vmem_to_hbm [thread:$0]  (%p522_p5), %s635_s8, 256, %s640_s21, %s246_s22  }
 0x113 PF: > { %p369_p1 = scmp.ge.s32.totalorder %s465_s12, 2  ;;  %s272_s4 = sand.u32 1, %s453_s9  }
 0x114   : > { %s273_s5 = scalar_lea.sflag [#allocation3], %s272_s4 }
 0x115   : > { %p366_p2 = pnand %p369_p1, %p526_p6 }
 0x117   : > { %448 = dma.done.wait (!%p366_p2), %s273_s5, 256  }
 0x118   : > { %450 = vsyncadd (!%p366_p2), %s273_s5, 4294967040  ;;  %p12_p3 = scmp.ge.s32.totalorder %s509_s15, 6   ;;  %s685_s9 = smov %s457_s10 }
 0x119   : > { %s686_s10 = smov %s461_s11  ;;  %s687_s11 = smov %s520_s18 }
 0x11a   : > { %s688_s12 = smov %s509_s15  ;;  %14 = sbr.rel (!%p12_p3) target bundleno = 3 (0x3), region = 63 }
 0x121   :  { %278 = vsyncpa [#allocation3], 1 }
 0x122   :  { %280 = vsyncpa [#allocation3 + $0x1], 1 }

// kernel: spectral_conv1d.4
= control target key start
LH: loop header
LB: loop body
LE: loop exit
PB: predicated region body
PF: predicated region fallthrough
CT: control target
= control target key end

     0   :  { %v5844_v0 = vmov 0.0|0.0   ;;  %vm5845_vm0 = vmmov 0   ;;  %v5846_v6 = vmov 0.0   ;;  %vm203_vm1 = vcmask 130048   ;;  %s6950_s1 = inlined_call_operand.vmem [shape: f32[64,16,16], index: 1, kind: input, shape index: {}]   ;;  %s6951_s0 = inlined_call_operand.vmem [shape: f32[64,4,16], index: 0, kind: input, shape index: {}]   ;;  %s6952_s2 = inlined_call_operand.vmem [shape: f32[64,4,16], index: 2, kind: output, shape index: {}]  }
   0x1   :  { %5649 = vmatprep.subr.bf16.mxu0 %v5844_v0  ;;  %5652 = vmatprep.subr.bf16.mxu1 %v5844_v0  ;;  %v75_v1 = vld [vmem:[%s6950_s1] sm:$0xff]  ;;  %v76_v2 = vld [vmem:[%s6950_s1 + $0x8] sm:$0xff]  ;;  %v77_v3 = vld [vmem:[%s6950_s1 + $0x10] sm:$0xff]  ;;  %vm4876_vm2 = vcmask 125952  }
   0x2   :  { %v5650_v4 = vpack.c.bf16 %v76_v2, %v75_v1  ;;  %v78_v5 = vld [vmem:[%s6950_s1 + $0x18] sm:$0xff]  ;;  %5205 = vmatprep.mubr.msk.f32.mxu0 %vm5845_vm0, %v5846_v6  ;;  %5212 = vmatprep.mubr.msk.f32.mxu1 %vm5845_vm0, %v5846_v6  ;;  %v79_v8 = vld [vmem:[%s6950_s1 + $0x20] sm:$0xff]  ;;  %v80_v9 = vld [vmem:[%s6950_s1 + $0x28] sm:$0xff] }
   0x3   :  { %v5653_v7 = vpack.c.bf16 %v78_v5, %v77_v3  ;;  %v81_v10 = vld [vmem:[%s6950_s1 + $0x30] sm:$0xff]  ;;  %v11_v11 = vld [vmem:[%s6951_s0] sm:$0xf]  ;;  %v5656_v12 = vpack.c.bf16 %v80_v9, %v79_v8  ;;  %v82_v13 = vld [vmem:[%s6950_s1 + $0x38] sm:$0xff] }
   0x4   :  { %5651 = vmatpush3.bf16.msra.mxu0 %v5650_v4  ;;  %v12_v14 = vld [vmem:[%s6951_s0 + $0x4] sm:$0xf]  ;;  %v5659_v15 = vpack.c.bf16 %v82_v13, %v81_v10  ;;  %v84_v17 = vld [vmem:[%s6950_s1 + $0x48] sm:$0xff]  ;;  %v85_v18 = vld [vmem:[%s6950_s1 + $0x50] sm:$0xff] }
   0x5   :  { %5654 = vmatpush3.bf16.msra.mxu1 %v5653_v7  ;;  %5655 = vmatprep.subr.bf16.mxu0 %v5844_v0  ;;  %v83_v16 = vld [vmem:[%s6950_s1 + $0x40] sm:$0xff]  ;;  %v86_v19 = vld [vmem:[%s6950_s1 + $0x58] sm:$0xff]  ;;  %v13_v20 = vld [vmem:[%s6951_s0 + $0x8] sm:$0xf] }
   0x6   :  { %5658 = vmatprep.subr.bf16.mxu1 %v5844_v0  ;;  %v5662_v21 = vpack.c.bf16 %v84_v17, %v83_v16  ;;  %v14_v22 = vld [vmem:[%s6951_s0 + $0xc] sm:$0xf]  ;;  %v5665_v23 = vpack.c.bf16 %v86_v19, %v85_v18  ;;  %v87_v24 = vld [vmem:[%s6950_s1 + $0x60] sm:$0xff]  ;;  %v89_v26 = vld [vmem:[%s6950_s1 + $0x70] sm:$0xff] }
   0x7   :  { %5206 = vmatmul.mubr.msk.f32.vlgmr.msra.gmra.mrb[0].mxu0 %vm203_vm1, %v11_v11  ;;  %v88_v25 = vld [vmem:[%s6950_s1 + $0x68] sm:$0xff]  ;;  %v90_v27 = vld [vmem:[%s6950_s1 + $0x78] sm:$0xff]  ;;  %v15_v28 = vld [vmem:[%s6951_s0 + $0x10] sm:$0xf] }
   0x8   :  { %5213 = vmatmul.mubr.msk.f32.vlgmr.msra.gmra.mrb[0].mxu1 %vm203_vm1, %v12_v14  ;;  %5657 = vmatpush3.bf16.msra.mxu0 %v5656_v12  ;;  %v5668_v29 = vpack.c.bf16 %v88_v25, %v87_v24  ;;  %v16_v30 = vld [vmem:[%s6951_s0 + $0x14] sm:$0xf]  ;;  %v5671_v31 = vpack.c.bf16 %v90_v27, %v89_v26  ;;  %v91_v32 = vld [vmem:[%s6950_s1 + $0x80] sm:$0xff]  ;;  %v92_v33 = vld [vmem:[%s6950_s1 + $0x88] sm:$0xff] }
   0x9   :  { %5660 = vmatpush3.bf16.msra.mxu1 %v5659_v15  ;;  %5219 = vmatprep.mubr.msk.f32.mxu0 %vm5845_vm0, %v5846_v6  ;;  %v93_v34 = vld [vmem:[%s6950_s1 + $0x90] sm:$0xff]  ;;  %v94_v35 = vld [vmem:[%s6950_s1 + $0x98] sm:$0xff]  ;;  %v5674_v37 = vpack.c.bf16 %v92_v33, %v91_v32  ;;  %v95_v40 = vld [vmem:[%s6950_s1 + $0xa0] sm:$0xff] }
   0xa   :  { %5226 = vmatprep.mubr.msk.f32.mxu1 %vm5845_vm0, %v5846_v6  ;;  %5661 = vmatprep.subr.bf16.mxu0 %v5844_v0  ;;  %v17_v36 = vld [vmem:[%s6951_s0 + $0x18] sm:$0xf]  ;;  %v18_v38 = vld [vmem:[%s6951_s0 + $0x1c] sm:$0xf]  ;;  %v5677_v39 = vpack.c.bf16 %v94_v35, %v93_v34  ;;  %v96_v41 = vld [vmem:[%s6950_s1 + $0xa8] sm:$0xff] }
   0xb   :  { %5220 = vmatmul.mubr.msk.f32.vlgmr.msra.gmra.mrb[2].mxu0 %vm203_vm1, %v13_v20  ;;  %5664 = vmatprep.subr.bf16.mxu1 %v5844_v0  ;;  %v97_v42 = vld [vmem:[%s6950_s1 + $0xb0] sm:$0xff]  ;;  %v98_v43 = vld [vmem:[%s6950_s1 + $0xb8] sm:$0xff]  ;;  %v19_v44 = vld [vmem:[%s6951_s0 + $0x20] sm:$0xf]  ;;  %v5680_v45 = vpack.c.bf16 %v96_v41, %v95_v40 }
   0xc   :  { %5227 = vmatmul.mubr.msk.f32.vlgmr.msra.gmra.mrb[2].mxu1 %vm203_vm1, %v14_v22  ;;  %5663 = vmatpush3.bf16.msra.mxu0 %v5662_v21  ;;  %v20_v46 = vld [vmem:[%s6951_s0 + $0x24] sm:$0xf]  ;;  %v5683_v47 = vpack.c.bf16 %v98_v43, %v97_v42  ;;  %v100_v49 = vld [vmem:[%s6950_s1 + $0xc8] sm:$0xff]  ;;  %v101_v50 = vld [vmem:[%s6950_s1 + $0xd0] sm:$0xff] }
   0xd   :  { %5666 = vmatpush3.bf16.msra.mxu1 %v5665_v23  ;;  %5233 = vmatprep.mubr.msk.f32.mxu0 %vm5845_vm0, %v5846_v6  ;;  %v99_v48 = vld [vmem:[%s6950_s1 + $0xc0] sm:$0xff]  ;;  %v102_v51 = vld [vmem:[%s6950_s1 + $0xd8] sm:$0xff]  ;;  %v21_v52 = vld [vmem:[%s6951_s0 + $0x28] sm:$0xf] }
   0xe   :  { %5240 = vmatprep.mubr.msk.f32.mxu1 %vm5845_vm0, %v5846_v6  ;;  %5667 = vmatprep.subr.bf16.mxu0 %v5844_v0  ;;  %v5686_v53 = vpack.c.bf16 %v100_v49, %v99_v48  ;;  %v22_v54 = vld [vmem:[%s6951_s0 + $0x2c] sm:$0xf]  ;;  %v5689_v55 = vpack.c.bf16 %v102_v51, %v101_v50  ;;  %v103_v56 = vld [vmem:[%s6950_s1 + $0xe0] sm:$0xff]  ;;  %v105_v58 = vld [vmem:[%s6950_s1 + $0xf0] sm:$0xff] }
   0xf   :  { %5234 = vmatmul.mubr.msk.f32.vlgmr.msra.gmra.mrb[4].mxu0 %vm203_vm1, %v15_v28  ;;  %5670 = vmatprep.subr.bf16.mxu1 %v5844_v0  ;;  %v104_v57 = vld [vmem:[%s6950_s1 + $0xe8] sm:$0xff]  ;;  %v106_v59 = vld [vmem:[%s6950_s1 + $0xf8] sm:$0xff]  ;;  %v23_v60 = vld [vmem:[%s6951_s0 + $0x30] sm:$0xf] }
  0x10   :  { %5241 = vmatmul.mubr.msk.f32.vlgmr.msra.gmra.mrb[4].mxu1 %vm203_vm1, %v16_v30  ;;  %5669 = vmatpush3.bf16.msra.mxu0 %v5668_v29  ;;  %v5692_v61 = vpack.c.bf16 %v104_v57, %v103_v56  ;;  %v24_v62 = vld [vmem:[%s6951_s0 + $0x34] sm:$0xf]  ;;  %v5695_v63 = vpack.c.bf16 %v106_v59, %v105_v58  ;;  %v107_v1 = vld [vmem:[%s6950_s1 + $0x100] sm:$0xff]  ;;  %v108_v2 = vld [vmem:[%s6950_s1 + $0x108] sm:$0xff] }
  0x11   :  { %5672 = vmatpush3.bf16.msra.mxu1 %v5671_v31  ;;  %5247 = vmatprep.mubr.msk.f32.mxu0 %vm5845_vm0, %v5846_v6  ;;  %v109_v3 = vld [vmem:[%s6950_s1 + $0x110] sm:$0xff]  ;;  %v110_v4 = vld [vmem:[%s6950_s1 + $0x118] sm:$0xff]  ;;  %v5698_v7 = vpack.c.bf16 %v108_v2, %v107_v1  ;;  %v111_v10 = vld [vmem:[%s6950_s1 + $0x120] sm:$0xff] }
  0x12   :  { %5254 = vmatprep.mubr.msk.f32.mxu1 %vm5845_vm0, %v5846_v6  ;;  %5673 = vmatprep.subr.bf16.mxu0 %v5844_v0  ;;  %v25_v5 = vld [vmem:[%s6951_s0 + $0x38] sm:$0xf]  ;;  %v26_v8 = vld [vmem:[%s6951_s0 + $0x3c] sm:$0xf]  ;;  %v5701_v9 = vpack.c.bf16 %v110_v4, %v109_v3  ;;  %v112_v11 = vld [vmem:[%s6950_s1 + $0x128] sm:$0xff] }
  0x13   :  { %5248 = vmatmul.mubr.msk.f32.vlgmr.msra.gmra.mrb[6].mxu0 %vm203_vm1, %v17_v36  ;;  %5676 = vmatprep.subr.bf16.mxu1 %v5844_v0  ;;  %v113_v12 = vld [vmem:[%s6950_s1 + $0x130] sm:$0xff]  ;;  %v114_v13 = vld [vmem:[%s6950_s1 + $0x138] sm:$0xff]  ;;  %v27_v14 = vld [vmem:[%s6951_s0 + $0x40] sm:$0xf]  ;;  %v5704_v15 = vpack.c.bf16 %v112_v11, %v111_v10 }
  0x14   :  { %5255 = vmatmul.mubr.msk.f32.vlgmr.msra.gmra.mrb[6].mxu1 %vm203_vm1, %v18_v38  ;;  %5675 = vmatpush3.bf16.msra.mxu0 %v5674_v37  ;;  %v28_v16 = vld [vmem:[%s6951_s0 + $0x44] sm:$0xf]  ;;  %v5707_v17 = vpack.c.bf16 %v114_v13, %v113_v12  ;;  %v116_v19 = vld [vmem:[%s6950_s1 + $0x148] sm:$0xff]  ;;  %v117_v20 = vld [vmem:[%s6950_s1 + $0x150] sm:$0xff] }
  0x15   :  { %5678 = vmatpush3.bf16.msra.mxu1 %v5677_v39  ;;  %5261 = vmatprep.mubr.msk.f32.mxu0 %vm5845_vm0, %v5846_v6  ;;  %v115_v18 = vld [vmem:[%s6950_s1 + $0x140] sm:$0xff]  ;;  %v118_v21 = vld [vmem:[%s6950_s1 + $0x158] sm:$0xff]  ;;  %v29_v22 = vld [vmem:[%s6951_s0 + $0x48] sm:$0xf] }
  0x16   :  { %5268 = vmatprep.mubr.msk.f32.mxu1 %vm5845_vm0, %v5846_v6  ;;  %5679 = vmatprep.subr.bf16.mxu0 %v5844_v0  ;;  %v5710_v23 = vpack.c.bf16 %v116_v19, %v115_v18  ;;  %v30_v24 = vld [vmem:[%s6951_s0 + $0x4c] sm:$0xf]  ;;  %v5713_v25 = vpack.c.bf16 %v118_v21, %v117_v20  ;;  %v119_v26 = vld [vmem:[%s6950_s1 + $0x160] sm:$0xff]  ;;  %v121_v28 = vld [vmem:[%s6950_s1 + $0x170] sm:$0xff] }
  0x17   :  { %5262 = vmatmul.mubr.msk.f32.vlgmr.msra.gmra.mrb[8].mxu0 %vm203_vm1, %v19_v44  ;;  %5682 = vmatprep.subr.bf16.mxu1 %v5844_v0  ;;  %v120_v27 = vld [vmem:[%s6950_s1 + $0x168] sm:$0xff]  ;;  %v122_v29 = vld [vmem:[%s6950_s1 + $0x178] sm:$0xff]  ;;  %v31_v30 = vld [vmem:[%s6951_s0 + $0x50] sm:$0xf] }
  0x18   :  { %5269 = vmatmul.mubr.msk.f32.vlgmr.msra.gmra.mrb[8].mxu1 %vm203_vm1, %v20_v46  ;;  %5681 = vmatpush3.bf16.msra.mxu0 %v5680_v45  ;;  %v5716_v31 = vpack.c.bf16 %v120_v27, %v119_v26  ;;  %v32_v32 = vld [vmem:[%s6951_s0 + $0x54] sm:$0xf]  ;;  %v5719_v33 = vpack.c.bf16 %v122_v29, %v121_v28  ;;  %v123_v34 = vld [vmem:[%s6950_s1 + $0x180] sm:$0xff]  ;;  %v124_v35 = vld [vmem:[%s6950_s1 + $0x188] sm:$0xff] }
  0x19   :  { %5684 = vmatpush3.bf16.msra.mxu1 %v5683_v47  ;;  %5275 = vmatprep.mubr.msk.f32.mxu0 %vm5845_vm0, %v5846_v6  ;;  %v125_v36 = vld [vmem:[%s6950_s1 + $0x190] sm:$0xff]  ;;  %v126_v37 = vld [vmem:[%s6950_s1 + $0x198] sm:$0xff]  ;;  %v5722_v39 = vpack.c.bf16 %v124_v35, %v123_v34  ;;  %v127_v42 = vld [vmem:[%s6950_s1 + $0x1a0] sm:$0xff] }
  0x1a   :  { %5282 = vmatprep.mubr.msk.f32.mxu1 %vm5845_vm0, %v5846_v6  ;;  %5685 = vmatprep.subr.bf16.mxu0 %v5844_v0  ;;  %v33_v38 = vld [vmem:[%s6951_s0 + $0x58] sm:$0xf]  ;;  %v34_v40 = vld [vmem:[%s6951_s0 + $0x5c] sm:$0xf]  ;;  %v5725_v41 = vpack.c.bf16 %v126_v37, %v125_v36  ;;  %v128_v43 = vld [vmem:[%s6950_s1 + $0x1a8] sm:$0xff] }
  0x1b   :  { %5276 = vmatmul.mubr.msk.f32.vlgmr.msra.gmra.mrb[10].mxu0 %vm203_vm1, %v21_v52  ;;  %5688 = vmatprep.subr.bf16.mxu1 %v5844_v0  ;;  %v129_v44 = vld [vmem:[%s6950_s1 + $0x1b0] sm:$0xff]  ;;  %v130_v45 = vld [vmem:[%s6950_s1 + $0x1b8] sm:$0xff]  ;;  %v35_v46 = vld [vmem:[%s6951_s0 + $0x60] sm:$0xf]  ;;  %v5728_v47 = vpack.c.bf16 %v128_v43, %v127_v42 }
  0x1c   :  { %5283 = vmatmul.mubr.msk.f32.vlgmr.msra.gmra.mrb[10].mxu1 %vm203_vm1, %v22_v54  ;;  %5687 = vmatpush3.bf16.msra.mxu0 %v5686_v53  ;;  %v36_v48 = vld [vmem:[%s6951_s0 + $0x64] sm:$0xf]  ;;  %v5731_v49 = vpack.c.bf16 %v130_v45, %v129_v44  ;;  %v132_v51 = vld [vmem:[%s6950_s1 + $0x1c8] sm:$0xff]  ;;  %v133_v52 = vld [vmem:[%s6950_s1 + $0x1d0] sm:$0xff] }
  0x1d   :  { %5690 = vmatpush3.bf16.msra.mxu1 %v5689_v55  ;;  %5289 = vmatprep.mubr.msk.f32.mxu0 %vm5845_vm0, %v5846_v6  ;;  %v131_v50 = vld [vmem:[%s6950_s1 + $0x1c0] sm:$0xff]  ;;  %v134_v53 = vld [vmem:[%s6950_s1 + $0x1d8] sm:$0xff]  ;;  %v37_v54 = vld [vmem:[%s6951_s0 + $0x68] sm:$0xf] }
  0x1e   :  { %5296 = vmatprep.mubr.msk.f32.mxu1 %vm5845_vm0, %v5846_v6  ;;  %5691 = vmatprep.subr.bf16.mxu0 %v5844_v0  ;;  %v5734_v55 = vpack.c.bf16 %v132_v51, %v131_v50  ;;  %v38_v56 = vld [vmem:[%s6951_s0 + $0x6c] sm:$0xf]  ;;  %v5737_v57 = vpack.c.bf16 %v134_v53, %v133_v52  ;;  %v135_v58 = vld [vmem:[%s6950_s1 + $0x1e0] sm:$0xff]  ;;  %v40_v1 = vld [vmem:[%s6951_s0 + $0x74] sm:$0xf] }
  0x1f   :  { %5290 = vmatmul.mubr.msk.f32.vlgmr.msra.gmra.mrb[12].mxu0 %vm203_vm1, %v23_v60  ;;  %5694 = vmatprep.subr.bf16.mxu1 %v5844_v0  ;;  %v136_v59 = vld [vmem:[%s6950_s1 + $0x1e8] sm:$0xff]  ;;  %v137_v60 = vld [vmem:[%s6950_s1 + $0x1f0] sm:$0xff]  ;;  %v139_v3 = vld [vmem:[%s6950_s1 + $0x200] sm:$0xff] }
  0x20   :  { %5297 = vmatmul.mubr.msk.f32.vlgmr.msra.gmra.mrb[12].mxu1 %vm203_vm1, %v24_v62  ;;  %5693 = vmatpush3.bf16.msra.mxu0 %v5692_v61  ;;  %v138_v61 = vld [vmem:[%s6950_s1 + $0x1f8] sm:$0xff]  ;;  %v39_v62 = vld [vmem:[%s6951_s0 + $0x70] sm:$0xf]  ;;  %v140_v4 = vld [vmem:[%s6950_s1 + $0x208] sm:$0xff] }
  0x21   :  { %5696 = vmatpush3.bf16.msra.mxu1 %v5695_v63  ;;  %5303 = vmatprep.mubr.msk.f32.mxu0 %vm5845_vm0, %v5846_v6  ;;  %v5740_v63 = vpack.c.bf16 %v136_v59, %v135_v58  ;;  %v5743_v2 = vpack.c.bf16 %v138_v61, %v137_v60  ;;  %v42_v10 = vld [vmem:[%s6951_s0 + $0x7c] sm:$0xf]  ;;  %v143_v12 = vld [vmem:[%s6950_s1 + $0x220] sm:$0xff]  ;;  %v144_v13 = vld [vmem:[%s6950_s1 + $0x228] sm:$0xff] }
  0x22   :  { %5310 = vmatprep.mubr.msk.f32.mxu1 %vm5845_vm0, %v5846_v6  ;;  %5697 = vmatprep.subr.bf16.mxu0 %v5844_v0  ;;  %v44_v18 = vld [vmem:[%s6951_s0 + $0x84] sm:$0xf]  ;;  %v148_v21 = vld [vmem:[%s6950_s1 + $0x248] sm:$0xff]  ;;  %v48_v34 = vld [vmem:[%s6951_s0 + $0x94] sm:$0xf] }
  0x23   :  { %5304 = vmatmul.mubr.msk.f32.vlgmr.msra.gmra.mrb[14].mxu0 %vm203_vm1, %v25_v5  ;;  %5700 = vmatprep.subr.bf16.mxu1 %v5844_v0  ;;  %v141_v5 = vld [vmem:[%s6950_s1 + $0x210] sm:$0xff]  ;;  %v147_v20 = vld [vmem:[%s6950_s1 + $0x240] sm:$0xff]  ;;  %v46_v26 = vld [vmem:[%s6951_s0 + $0x8c] sm:$0xf] }
  0x24   :  { %5311 = vmatmul.mubr.msk.f32.vlgmr.msra.gmra.mrb[14].mxu1 %vm203_vm1, %v26_v8  ;;  %5699 = vmatpush3.bf16.msra.mxu0 %v5698_v7  ;;  %v142_v7 = vld [vmem:[%s6950_s1 + $0x218] sm:$0xff]  ;;  %v151_v28 = vld [vmem:[%s6950_s1 + $0x260] sm:$0xff]  ;;  %v152_v29 = vld [vmem:[%s6950_s1 + $0x268] sm:$0xff] }
  0x25   :  { %5702 = vmatpush3.bf16.msra.mxu1 %v5701_v9  ;;  %5317 = vmatprep.mubr.msk.f32.mxu0 %vm5845_vm0, %v5846_v6  ;;  %v41_v8 = vld [vmem:[%s6951_s0 + $0x78] sm:$0xf]  ;;  %v5746_v9 = vpack.c.bf16 %v140_v4, %v139_v3  ;;  %v5749_v11 = vpack.c.bf16 %v142_v7, %v141_v5  ;;  %v155_v36 = vld [vmem:[%s6950_s1 + $0x280] sm:$0xff]  ;;  %v156_v37 = vld [vmem:[%s6950_s1 + $0x288] sm:$0xff] }
  0x26   :  { %5324 = vmatprep.mubr.msk.f32.mxu1 %vm5845_vm0, %v5846_v6  ;;  %5703 = vmatprep.subr.bf16.mxu0 %v5844_v0  ;;  %v50_v42 = vld [vmem:[%s6951_s0 + $0x9c] sm:$0xf]  ;;  %v159_v44 = vld [vmem:[%s6950_s1 + $0x2a0] sm:$0xff]  ;;  %v160_v45 = vld [vmem:[%s6950_s1 + $0x2a8] sm:$0xff] }
  0x27   :  { %5318 = vmatmul.mubr.msk.f32.vlgmr.msra.gmra.mrb[16].mxu0 %vm203_vm1, %v27_v14  ;;  %5706 = vmatprep.subr.bf16.mxu1 %v5844_v0  ;;  %v145_v14 = vld [vmem:[%s6950_s1 + $0x230] sm:$0xff]  ;;  %v52_v50 = vld [vmem:[%s6951_s0 + $0xa4] sm:$0xf]  ;;  %v164_v53 = vld [vmem:[%s6950_s1 + $0x2c8] sm:$0xff] }
  0x28   :  { %5325 = vmatmul.mubr.msk.f32.vlgmr.msra.gmra.mrb[16].mxu1 %vm203_vm1, %v28_v16  ;;  %5705 = vmatpush3.bf16.msra.mxu0 %v5704_v15  ;;  %v146_v15 = vld [vmem:[%s6950_s1 + $0x238] sm:$0xff]  ;;  %v43_v16 = vld [vmem:[%s6951_s0 + $0x80] sm:$0xf]  ;;  %v54_v58 = vld [vmem:[%s6951_s0 + $0xac] sm:$0xf] }
  0x29   :  { %5708 = vmatpush3.bf16.msra.mxu1 %v5707_v17  ;;  %5331 = vmatprep.mubr.msk.f32.mxu0 %vm5845_vm0, %v5846_v6  ;;  %v5752_v17 = vpack.c.bf16 %v144_v13, %v143_v12  ;;  %v5755_v19 = vpack.c.bf16 %v146_v15, %v145_v14  ;;  %v163_v52 = vld [vmem:[%s6950_s1 + $0x2c0] sm:$0xff]  ;;  %v168_v61 = vld [vmem:[%s6950_s1 + $0x2e8] sm:$0xff]  ;;  %v56_v3 = vld [vmem:[%s6951_s0 + $0xb4] sm:$0xf] }
  0x2a   :  { %5338 = vmatprep.mubr.msk.f32.mxu1 %vm5845_vm0, %v5846_v6  ;;  %5709 = vmatprep.subr.bf16.mxu0 %v5844_v0  ;;  %v167_v60 = vld [vmem:[%s6950_s1 + $0x2e0] sm:$0xff]  ;;  %v172_v7 = vld [vmem:[%s6950_s1 + $0x308] sm:$0xff]  ;;  %v58_v12 = vld [vmem:[%s6951_s0 + $0xbc] sm:$0xf] }
  0x2b   :  { %5332 = vmatmul.mubr.msk.f32.vlgmr.msra.gmra.mrb[18].mxu0 %vm203_vm1, %v29_v22  ;;  %5712 = vmatprep.subr.bf16.mxu1 %v5844_v0  ;;  %v149_v22 = vld [vmem:[%s6950_s1 + $0x250] sm:$0xff]  ;;  %v171_v5 = vld [vmem:[%s6950_s1 + $0x300] sm:$0xff]  ;;  %v176_v15 = vld [vmem:[%s6950_s1 + $0x328] sm:$0xff] }
  0x2c   :  { %5339 = vmatmul.mubr.msk.f32.vlgmr.msra.gmra.mrb[18].mxu1 %vm203_vm1, %v30_v24  ;;  %5711 = vmatpush3.bf16.msra.mxu0 %v5710_v23  ;;  %v150_v23 = vld [vmem:[%s6950_s1 + $0x258] sm:$0xff]  ;;  %v45_v24 = vld [vmem:[%s6951_s0 + $0x88] sm:$0xf]  ;;  %v175_v14 = vld [vmem:[%s6950_s1 + $0x320] sm:$0xff] }
  0x2d   :  { %5714 = vmatpush3.bf16.msra.mxu1 %v5713_v25  ;;  %5345 = vmatprep.mubr.msk.f32.mxu0 %vm5845_vm0, %v5846_v6  ;;  %v5758_v25 = vpack.c.bf16 %v148_v21, %v147_v20  ;;  %v5761_v27 = vpack.c.bf16 %v150_v23, %v149_v22  ;;  %v60_v20 = vld [vmem:[%s6951_s0 + $0xc4] sm:$0xf]  ;;  %v180_v23 = vld [vmem:[%s6950_s1 + $0x348] sm:$0xff] }
  0x2e   :  { %5352 = vmatprep.mubr.msk.f32.mxu1 %vm5845_vm0, %v5846_v6  ;;  %5715 = vmatprep.subr.bf16.mxu0 %v5844_v0  ;;  %v179_v22 = vld [vmem:[%s6950_s1 + $0x340] sm:$0xff] }
  0x2f   :  { %5346 = vmatmul.mubr.msk.f32.vlgmr.msra.gmra.mrb[20].mxu0 %vm203_vm1, %v31_v30  ;;  %5718 = vmatprep.subr.bf16.mxu1 %v5844_v0  ;;  %v153_v30 = vld [vmem:[%s6950_s1 + $0x270] sm:$0xff] }
  0x30   :  { %5353 = vmatmul.mubr.msk.f32.vlgmr.msra.gmra.mrb[20].mxu1 %vm203_vm1, %v32_v32  ;;  %5717 = vmatpush3.bf16.msra.mxu0 %v5716_v31  ;;  %v154_v31 = vld [vmem:[%s6950_s1 + $0x278] sm:$0xff]  ;;  %v47_v32 = vld [vmem:[%s6951_s0 + $0x90] sm:$0xf] }
  0x31   :  { %5720 = vmatpush3.bf16.msra.mxu1 %v5719_v33  ;;  %5359 = vmatprep.mubr.msk.f32.mxu0 %vm5845_vm0, %v5846_v6  ;;  %v5764_v33 = vpack.c.bf16 %v152_v29, %v151_v28  ;;  %v5767_v35 = vpack.c.bf16 %v154_v31, %v153_v30  ;;  %v62_v28 = vld [vmem:[%s6951_s0 + $0xcc] sm:$0xf]  ;;  %v183_v30 = vld [vmem:[%s6950_s1 + $0x360] sm:$0xff] }
  0x32   :  { %5366 = vmatprep.mubr.msk.f32.mxu1 %vm5845_vm0, %v5846_v6  ;;  %5721 = vmatprep.subr.bf16.mxu0 %v5844_v0  ;;  %v184_v31 = vld [vmem:[%s6950_s1 + $0x368] sm:$0xff] }
  0x33   :  { %5360 = vmatmul.mubr.msk.f32.vlgmr.msra.gmra.mrb[22].mxu0 %vm203_vm1, %v33_v38  ;;  %5724 = vmatprep.subr.bf16.mxu1 %v5844_v0  ;;  %v157_v38 = vld [vmem:[%s6950_s1 + $0x290] sm:$0xff] }
  0x34   :  { %5367 = vmatmul.mubr.msk.f32.vlgmr.msra.gmra.mrb[22].mxu1 %vm203_vm1, %v34_v40  ;;  %5723 = vmatpush3.bf16.msra.mxu0 %v5722_v39  ;;  %v158_v39 = vld [vmem:[%s6950_s1 + $0x298] sm:$0xff] }
  0x35   :  { %5726 = vmatpush3.bf16.msra.mxu1 %v5725_v41  ;;  %5373 = vmatprep.mubr.msk.f32.mxu0 %vm5845_vm0, %v5846_v6  ;;  %v49_v40 = vld [vmem:[%s6951_s0 + $0x98] sm:$0xf]  ;;  %v5770_v41 = vpack.c.bf16 %v156_v37, %v155_v36  ;;  %v5773_v43 = vpack.c.bf16 %v158_v39, %v157_v38  ;;  %v64_v36 = vld [vmem:[%s6951_s0 + $0xd4] sm:$0xf]  ;;  %v187_v38 = vld [vmem:[%s6950_s1 + $0x380] sm:$0xff] }
  0x36   :  { %5380 = vmatprep.mubr.msk.f32.mxu1 %vm5845_vm0, %v5846_v6  ;;  %5727 = vmatprep.subr.bf16.mxu0 %v5844_v0  ;;  %v188_v39 = vld [vmem:[%s6950_s1 + $0x388] sm:$0xff] }
  0x37   :  { %5374 = vmatmul.mubr.msk.f32.vlgmr.msra.gmra.mrb[24].mxu0 %vm203_vm1, %v35_v46  ;;  %5730 = vmatprep.subr.bf16.mxu1 %v5844_v0  ;;  %v161_v46 = vld [vmem:[%s6950_s1 + $0x2b0] sm:$0xff] }
  0x38   :  { %5381 = vmatmul.mubr.msk.f32.vlgmr.msra.gmra.mrb[24].mxu1 %vm203_vm1, %v36_v48  ;;  %5729 = vmatpush3.bf16.msra.mxu0 %v5728_v47  ;;  %v162_v47 = vld [vmem:[%s6950_s1 + $0x2b8] sm:$0xff]  ;;  %v51_v48 = vld [vmem:[%s6951_s0 + $0xa0] sm:$0xf] }
  0x39   :  { %5732 = vmatpush3.bf16.msra.mxu1 %v5731_v49  ;;  %5387 = vmatprep.mubr.msk.f32.mxu0 %vm5845_vm0, %v5846_v6  ;;  %v5776_v49 = vpack.c.bf16 %v160_v45, %v159_v44  ;;  %v5779_v51 = vpack.c.bf16 %v162_v47, %v161_v46  ;;  %v66_v44 = vld [vmem:[%s6951_s0 + $0xdc] sm:$0xf]  ;;  %v191_v46 = vld [vmem:[%s6950_s1 + $0x3a0] sm:$0xff]  ;;  %v192_v47 = vld [vmem:[%s6950_s1 + $0x3a8] sm:$0xff] }
  0x3a   :  { %5394 = vmatprep.mubr.msk.f32.mxu1 %vm5845_vm0, %v5846_v6  ;;  %5733 = vmatprep.subr.bf16.mxu0 %v5844_v0 }
  0x3b   :  { %5388 = vmatmul.mubr.msk.f32.vlgmr.msra.gmra.mrb[26].mxu0 %vm203_vm1, %v37_v54  ;;  %5736 = vmatprep.subr.bf16.mxu1 %v5844_v0  ;;  %v165_v54 = vld [vmem:[%s6950_s1 + $0x2d0] sm:$0xff] }
  0x3c   :  { %5395 = vmatmul.mubr.msk.f32.vlgmr.msra.gmra.mrb[26].mxu1 %vm203_vm1, %v38_v56  ;;  %5735 = vmatpush3.bf16.msra.mxu0 %v5734_v55  ;;  %v166_v55 = vld [vmem:[%s6950_s1 + $0x2d8] sm:$0xff]  ;;  %v53_v56 = vld [vmem:[%s6951_s0 + $0xa8] sm:$0xf] }
  0x3d   :  { %5738 = vmatpush3.bf16.msra.mxu1 %v5737_v57  ;;  %5401 = vmatprep.mubr.msk.f32.mxu0 %vm5845_vm0, %v5846_v6  ;;  %v5782_v57 = vpack.c.bf16 %v164_v53, %v163_v52  ;;  %v5785_v59 = vpack.c.bf16 %v166_v55, %v165_v54  ;;  %v68_v52 = vld [vmem:[%s6951_s0 + $0xe4] sm:$0xf]  ;;  %v196_v55 = vld [vmem:[%s6950_s1 + $0x3c8] sm:$0xff] }
  0x3e   :  { %5408 = vmatprep.mubr.msk.f32.mxu1 %vm5845_vm0, %v5846_v6  ;;  %5739 = vmatprep.subr.bf16.mxu0 %v5844_v0  ;;  %v195_v54 = vld [vmem:[%s6950_s1 + $0x3c0] sm:$0xff] }
  0x3f   :  { %5402 = vmatmul.mubr.msk.f32.vlgmr.msra.gmra.mrb[28].mxu0 %vm203_vm1, %v39_v62  ;;  %5742 = vmatprep.subr.bf16.mxu1 %v5844_v0  ;;  %v169_v62 = vld [vmem:[%s6950_s1 + $0x2f0] sm:$0xff] }
  0x40   :  { %5409 = vmatmul.mubr.msk.f32.vlgmr.msra.gmra.mrb[28].mxu1 %vm203_vm1, %v40_v1  ;;  %5741 = vmatpush3.bf16.msra.mxu0 %v5740_v63  ;;  %v170_v63 = vld [vmem:[%s6950_s1 + $0x2f8] sm:$0xff]  ;;  %v55_v1 = vld [vmem:[%s6951_s0 + $0xb0] sm:$0xf] }
  0x41   :  { %5744 = vmatpush3.bf16.msra.mxu1 %v5743_v2  ;;  %5415 = vmatprep.mubr.msk.f32.mxu0 %vm5845_vm0, %v5846_v6  ;;  %v5788_v2 = vpack.c.bf16 %v168_v61, %v167_v60  ;;  %v5791_v4 = vpack.c.bf16 %v170_v63, %v169_v62  ;;  %v70_v60 = vld [vmem:[%s6951_s0 + $0xec] sm:$0xf]  ;;  %v199_v62 = vld [vmem:[%s6950_s1 + $0x3e0] sm:$0xff] }
  0x42   :  { %5422 = vmatprep.mubr.msk.f32.mxu1 %vm5845_vm0, %v5846_v6  ;;  %5745 = vmatprep.subr.bf16.mxu0 %v5844_v0  ;;  %v200_v63 = vld [vmem:[%s6950_s1 + $0x3e8] sm:$0xff] }
  0x43   :  { %5416 = vmatmul.mubr.msk.f32.vlgmr.msra.gmra.mrb[30].mxu0 %vm203_vm1, %v41_v8  ;;  %5748 = vmatprep.subr.bf16.mxu1 %v5844_v0  ;;  %v173_v8 = vld [vmem:[%s6950_s1 + $0x310] sm:$0xff] }
  0x44   :  { %5423 = vmatmul.mubr.msk.f32.vlgmr.msra.gmra.mrb[30].mxu1 %vm203_vm1, %v42_v10  ;;  %5747 = vmatpush3.bf16.msra.mxu0 %v5746_v9  ;;  %v174_v9 = vld [vmem:[%s6950_s1 + $0x318] sm:$0xff] }
  0x45   :  { %5750 = vmatpush3.bf16.msra.mxu1 %v5749_v11  ;;  %5429 = vmatprep.mubr.msk.f32.mxu0 %vm5845_vm0, %v5846_v6  ;;  %v57_v10 = vld [vmem:[%s6951_s0 + $0xb8] sm:$0xf]  ;;  %v5794_v11 = vpack.c.bf16 %v172_v7, %v171_v5  ;;  %v5797_v13 = vpack.c.bf16 %v174_v9, %v173_v8  ;;  %v72_v5 = vld [vmem:[%s6951_s0 + $0xf4] sm:$0xf]  ;;  %v74_v9 = vld [vmem:[%s6951_s0 + $0xfc] sm:$0xf] }
  0x46   :  { %5436 = vmatprep.mubr.msk.f32.mxu1 %vm5845_vm0, %v5846_v6  ;;  %5751 = vmatprep.subr.bf16.mxu0 %v5844_v0  ;;  %v73_v8 = vld [vmem:[%s6951_s0 + $0xf8] sm:$0xf] }
  0x47   :  { %5430 = vmatmul.mubr.msk.f32.vlgmr.msra.gmra.mrb[32].mxu0 %vm203_vm1, %v43_v16  ;;  %5754 = vmatprep.subr.bf16.mxu1 %v5844_v0  ;;  %v177_v16 = vld [vmem:[%s6950_s1 + $0x330] sm:$0xff] }
  0x48   :  { %5437 = vmatmul.mubr.msk.f32.vlgmr.msra.gmra.mrb[32].mxu1 %vm203_vm1, %v44_v18  ;;  %5753 = vmatpush3.bf16.msra.mxu0 %v5752_v17  ;;  %v178_v17 = vld [vmem:[%s6950_s1 + $0x338] sm:$0xff]  ;;  %v59_v18 = vld [vmem:[%s6951_s0 + $0xc0] sm:$0xf] }
  0x49   :  { %5756 = vmatpush3.bf16.msra.mxu1 %v5755_v19  ;;  %5443 = vmatprep.mubr.msk.f32.mxu0 %vm5845_vm0, %v5846_v6  ;;  %v5800_v19 = vpack.c.bf16 %v176_v15, %v175_v14  ;;  %v5803_v21 = vpack.c.bf16 %v178_v17, %v177_v16 }
  0x4a   :  { %5450 = vmatprep.mubr.msk.f32.mxu1 %vm5845_vm0, %v5846_v6  ;;  %5757 = vmatprep.subr.bf16.mxu0 %v5844_v0 }
  0x4b   :  { %5444 = vmatmul.mubr.msk.f32.vlgmr.msra.gmra.mrb[34].mxu0 %vm203_vm1, %v45_v24  ;;  %5760 = vmatprep.subr.bf16.mxu1 %v5844_v0  ;;  %v181_v24 = vld [vmem:[%s6950_s1 + $0x350] sm:$0xff] }
  0x4c   :  { %5451 = vmatmul.mubr.msk.f32.vlgmr.msra.gmra.mrb[34].mxu1 %vm203_vm1, %v46_v26  ;;  %5759 = vmatpush3.bf16.msra.mxu0 %v5758_v25  ;;  %v182_v25 = vld [vmem:[%s6950_s1 + $0x358] sm:$0xff]  ;;  %v61_v26 = vld [vmem:[%s6951_s0 + $0xc8] sm:$0xf] }
  0x4d   :  { %5762 = vmatpush3.bf16.msra.mxu1 %v5761_v27  ;;  %5457 = vmatprep.mubr.msk.f32.mxu0 %vm5845_vm0, %v5846_v6  ;;  %v5806_v27 = vpack.c.bf16 %v180_v23, %v179_v22  ;;  %v5809_v29 = vpack.c.bf16 %v182_v25, %v181_v24 }
  0x4e   :  { %5464 = vmatprep.mubr.msk.f32.mxu1 %vm5845_vm0, %v5846_v6  ;;  %5763 = vmatprep.subr.bf16.mxu0 %v5844_v0 }
  0x4f   :  { %5458 = vmatmul.mubr.msk.f32.vlgmr.msra.gmra.mrb[36].mxu0 %vm203_vm1, %v47_v32  ;;  %5766 = vmatprep.subr.bf16.mxu1 %v5844_v0  ;;  %v185_v32 = vld [vmem:[%s6950_s1 + $0x370] sm:$0xff] }
  0x50   :  { %5465 = vmatmul.mubr.msk.f32.vlgmr.msra.gmra.mrb[36].mxu1 %vm203_vm1, %v48_v34  ;;  %5765 = vmatpush3.bf16.msra.mxu0 %v5764_v33  ;;  %v186_v33 = vld [vmem:[%s6950_s1 + $0x378] sm:$0xff]  ;;  %v63_v34 = vld [vmem:[%s6951_s0 + $0xd0] sm:$0xf] }
  0x51   :  { %5768 = vmatpush3.bf16.msra.mxu1 %v5767_v35  ;;  %5471 = vmatprep.mubr.msk.f32.mxu0 %vm5845_vm0, %v5846_v6  ;;  %v5812_v35 = vpack.c.bf16 %v184_v31, %v183_v30  ;;  %v5815_v37 = vpack.c.bf16 %v186_v33, %v185_v32 }
  0x52   :  { %5478 = vmatprep.mubr.msk.f32.mxu1 %vm5845_vm0, %v5846_v6  ;;  %5769 = vmatprep.subr.bf16.mxu0 %v5844_v0 }
  0x53   :  { %5472 = vmatmul.mubr.msk.f32.vlgmr.msra.gmra.mrb[38].mxu0 %vm203_vm1, %v49_v40  ;;  %5772 = vmatprep.subr.bf16.mxu1 %v5844_v0  ;;  %v189_v40 = vld [vmem:[%s6950_s1 + $0x390] sm:$0xff] }
  0x54   :  { %5479 = vmatmul.mubr.msk.f32.vlgmr.msra.gmra.mrb[38].mxu1 %vm203_vm1, %v50_v42  ;;  %5771 = vmatpush3.bf16.msra.mxu0 %v5770_v41  ;;  %v190_v41 = vld [vmem:[%s6950_s1 + $0x398] sm:$0xff] }
  0x55   :  { %5774 = vmatpush3.bf16.msra.mxu1 %v5773_v43  ;;  %5485 = vmatprep.mubr.msk.f32.mxu0 %vm5845_vm0, %v5846_v6  ;;  %v65_v42 = vld [vmem:[%s6951_s0 + $0xd8] sm:$0xf]  ;;  %v5818_v43 = vpack.c.bf16 %v188_v39, %v187_v38  ;;  %v5821_v45 = vpack.c.bf16 %v190_v41, %v189_v40 }
  0x56   :  { %5492 = vmatprep.mubr.msk.f32.mxu1 %vm5845_vm0, %v5846_v6  ;;  %5775 = vmatprep.subr.bf16.mxu0 %v5844_v0 }
  0x57   :  { %5486 = vmatmul.mubr.msk.f32.vlgmr.msra.gmra.mrb[40].mxu0 %vm203_vm1, %v51_v48  ;;  %5778 = vmatprep.subr.bf16.mxu1 %v5844_v0  ;;  %v193_v48 = vld [vmem:[%s6950_s1 + $0x3b0] sm:$0xff] }
  0x58   :  { %5493 = vmatmul.mubr.msk.f32.vlgmr.msra.gmra.mrb[40].mxu1 %vm203_vm1, %v52_v50  ;;  %5777 = vmatpush3.bf16.msra.mxu0 %v5776_v49  ;;  %v194_v49 = vld [vmem:[%s6950_s1 + $0x3b8] sm:$0xff]  ;;  %v67_v50 = vld [vmem:[%s6951_s0 + $0xe0] sm:$0xf] }
  0x59   :  { %5780 = vmatpush3.bf16.msra.mxu1 %v5779_v51  ;;  %5499 = vmatprep.mubr.msk.f32.mxu0 %vm5845_vm0, %v5846_v6  ;;  %v5824_v51 = vpack.c.bf16 %v192_v47, %v191_v46  ;;  %v5827_v53 = vpack.c.bf16 %v194_v49, %v193_v48 }
  0x5a   :  { %5506 = vmatprep.mubr.msk.f32.mxu1 %vm5845_vm0, %v5846_v6  ;;  %5781 = vmatprep.subr.bf16.mxu0 %v5844_v0 }
  0x5b   :  { %5500 = vmatmul.mubr.msk.f32.vlgmr.msra.gmra.mrb[42].mxu0 %vm203_vm1, %v53_v56  ;;  %5784 = vmatprep.subr.bf16.mxu1 %v5844_v0  ;;  %v197_v56 = vld [vmem:[%s6950_s1 + $0x3d0] sm:$0xff] }
  0x5c   :  { %5507 = vmatmul.mubr.msk.f32.vlgmr.msra.gmra.mrb[42].mxu1 %vm203_vm1, %v54_v58  ;;  %5783 = vmatpush3.bf16.msra.mxu0 %v5782_v57  ;;  %v198_v57 = vld [vmem:[%s6950_s1 + $0x3d8] sm:$0xff]  ;;  %v69_v58 = vld [vmem:[%s6951_s0 + $0xe8] sm:$0xf] }
  0x5d   :  { %5786 = vmatpush3.bf16.msra.mxu1 %v5785_v59  ;;  %5513 = vmatprep.mubr.msk.f32.mxu0 %vm5845_vm0, %v5846_v6  ;;  %v5830_v59 = vpack.c.bf16 %v196_v55, %v195_v54  ;;  %v5833_v61 = vpack.c.bf16 %v198_v57, %v197_v56 }
  0x5e   :  { %5520 = vmatprep.mubr.msk.f32.mxu1 %vm5845_vm0, %v5846_v6  ;;  %5787 = vmatprep.subr.bf16.mxu0 %v5844_v0 }
  0x5f   :  { %5514 = vmatmul.mubr.msk.f32.vlgmr.msra.gmra.mrb[44].mxu0 %vm203_vm1, %v55_v1  ;;  %5790 = vmatprep.subr.bf16.mxu1 %v5844_v0  ;;  %v201_v1 = vld [vmem:[%s6950_s1 + $0x3f0] sm:$0xff] }
  0x60   :  { %5521 = vmatmul.mubr.msk.f32.vlgmr.msra.gmra.mrb[44].mxu1 %vm203_vm1, %v56_v3  ;;  %5789 = vmatpush3.bf16.msra.mxu0 %v5788_v2  ;;  %v202_v2 = vld [vmem:[%s6950_s1 + $0x3f8] sm:$0xff]  ;;  %v71_v3 = vld [vmem:[%s6951_s0 + $0xf0] sm:$0xf] }
  0x61   :  { %5792 = vmatpush3.bf16.msra.mxu1 %v5791_v4  ;;  %5527 = vmatprep.mubr.msk.f32.mxu0 %vm5845_vm0, %v5846_v6  ;;  %v5836_v4 = vpack.c.bf16 %v200_v63, %v199_v62  ;;  %v5839_v7 = vpack.c.bf16 %v202_v2, %v201_v1 }
  0x62   :  { %5534 = vmatprep.mubr.msk.f32.mxu1 %vm5845_vm0, %v5846_v6  ;;  %5793 = vmatprep.subr.bf16.mxu0 %v5844_v0 }
  0x63   :  { %5528 = vmatmul.mubr.msk.f32.vlgmr.msra.gmra.mrb[46].mxu0 %vm203_vm1, %v57_v10  ;;  %5796 = vmatprep.subr.bf16.mxu1 %v5844_v0 }
  0x64   :  { %5535 = vmatmul.mubr.msk.f32.vlgmr.msra.gmra.mrb[46].mxu1 %vm203_vm1, %v58_v12  ;;  %5795 = vmatpush3.bf16.msra.mxu0 %v5794_v11 }
  0x65   :  { %5798 = vmatpush3.bf16.msra.mxu1 %v5797_v13  ;;  %5541 = vmatprep.mubr.msk.f32.mxu0 %vm5845_vm0, %v5846_v6 }
  0x66   :  { %5548 = vmatprep.mubr.msk.f32.mxu1 %vm5845_vm0, %v5846_v6  ;;  %5799 = vmatprep.subr.bf16.mxu0 %v5844_v0 }
  0x67   :  { %5542 = vmatmul.mubr.msk.f32.vlgmr.msra.gmra.mrb[48].mxu0 %vm203_vm1, %v59_v18  ;;  %5802 = vmatprep.subr.bf16.mxu1 %v5844_v0 }
  0x68   :  { %5549 = vmatmul.mubr.msk.f32.vlgmr.msra.gmra.mrb[48].mxu1 %vm203_vm1, %v60_v20  ;;  %5801 = vmatpush3.bf16.msra.mxu0 %v5800_v19 }
  0x69   :  { %5804 = vmatpush3.bf16.msra.mxu1 %v5803_v21  ;;  %5555 = vmatprep.mubr.msk.f32.mxu0 %vm5845_vm0, %v5846_v6 }
  0x6a   :  { %5562 = vmatprep.mubr.msk.f32.mxu1 %vm5845_vm0, %v5846_v6  ;;  %5805 = vmatprep.subr.bf16.mxu0 %v5844_v0 }
  0x6b   :  { %5556 = vmatmul.mubr.msk.f32.vlgmr.msra.gmra.mrb[50].mxu0 %vm203_vm1, %v61_v26  ;;  %5808 = vmatprep.subr.bf16.mxu1 %v5844_v0 }
  0x6c   :  { %5563 = vmatmul.mubr.msk.f32.vlgmr.msra.gmra.mrb[50].mxu1 %vm203_vm1, %v62_v28  ;;  %5807 = vmatpush3.bf16.msra.mxu0 %v5806_v27 }
  0x6d   :  { %5810 = vmatpush3.bf16.msra.mxu1 %v5809_v29  ;;  %5569 = vmatprep.mubr.msk.f32.mxu0 %vm5845_vm0, %v5846_v6 }
  0x6e   :  { %5576 = vmatprep.mubr.msk.f32.mxu1 %vm5845_vm0, %v5846_v6  ;;  %5811 = vmatprep.subr.bf16.mxu0 %v5844_v0 }
  0x6f   :  { %5570 = vmatmul.mubr.msk.f32.vlgmr.msra.gmra.mrb[52].mxu0 %vm203_vm1, %v63_v34  ;;  %5814 = vmatprep.subr.bf16.mxu1 %v5844_v0 }
  0x70   :  { %5577 = vmatmul.mubr.msk.f32.vlgmr.msra.gmra.mrb[52].mxu1 %vm203_vm1, %v64_v36  ;;  %5813 = vmatpush3.bf16.msra.mxu0 %v5812_v35 }
  0x71   :  { %5816 = vmatpush3.bf16.msra.mxu1 %v5815_v37  ;;  %5583 = vmatprep.mubr.msk.f32.mxu0 %vm5845_vm0, %v5846_v6 }
  0x72   :  { %5590 = vmatprep.mubr.msk.f32.mxu1 %vm5845_vm0, %v5846_v6  ;;  %5817 = vmatprep.subr.bf16.mxu0 %v5844_v0 }
  0x73   :  { %5584 = vmatmul.mubr.msk.f32.vlgmr.msra.gmra.mrb[54].mxu0 %vm203_vm1, %v65_v42  ;;  %5820 = vmatprep.subr.bf16.mxu1 %v5844_v0 }
  0x74   :  { %5591 = vmatmul.mubr.msk.f32.vlgmr.msra.gmra.mrb[54].mxu1 %vm203_vm1, %v66_v44  ;;  %5819 = vmatpush3.bf16.msra.mxu0 %v5818_v43 }
  0x75   :  { %5822 = vmatpush3.bf16.msra.mxu1 %v5821_v45  ;;  %5597 = vmatprep.mubr.msk.f32.mxu0 %vm5845_vm0, %v5846_v6 }
  0x76   :  { %5604 = vmatprep.mubr.msk.f32.mxu1 %vm5845_vm0, %v5846_v6  ;;  %5823 = vmatprep.subr.bf16.mxu0 %v5844_v0 }
  0x77   :  { %5598 = vmatmul.mubr.msk.f32.vlgmr.msra.gmra.mrb[56].mxu0 %vm203_vm1, %v67_v50  ;;  %5826 = vmatprep.subr.bf16.mxu1 %v5844_v0 }
  0x78   :  { %5605 = vmatmul.mubr.msk.f32.vlgmr.msra.gmra.mrb[56].mxu1 %vm203_vm1, %v68_v52  ;;  %5825 = vmatpush3.bf16.msra.mxu0 %v5824_v51 }
  0x79   :  { %5828 = vmatpush3.bf16.msra.mxu1 %v5827_v53  ;;  %5611 = vmatprep.mubr.msk.f32.mxu0 %vm5845_vm0, %v5846_v6 }
  0x7a   :  { %5618 = vmatprep.mubr.msk.f32.mxu1 %vm5845_vm0, %v5846_v6  ;;  %5829 = vmatprep.subr.bf16.mxu0 %v5844_v0 }
  0x7b   :  { %5612 = vmatmul.mubr.msk.f32.vlgmr.msra.gmra.mrb[58].mxu0 %vm203_vm1, %v69_v58  ;;  %5832 = vmatprep.subr.bf16.mxu1 %v5844_v0 }
  0x7c   :  { %5619 = vmatmul.mubr.msk.f32.vlgmr.msra.gmra.mrb[58].mxu1 %vm203_vm1, %v70_v60  ;;  %5831 = vmatpush3.bf16.msra.mxu0 %v5830_v59 }
  0x7d   :  { %5834 = vmatpush3.bf16.msra.mxu1 %v5833_v61  ;;  %5625 = vmatprep.mubr.msk.f32.mxu0 %vm5845_vm0, %v5846_v6 }
  0x7e   :  { %5632 = vmatprep.mubr.msk.f32.mxu1 %vm5845_vm0, %v5846_v6  ;;  %5835 = vmatprep.subr.bf16.mxu0 %v5844_v0 }
  0x7f   :  { %5626 = vmatmul.mubr.msk.f32.vlgmr.msra.gmra.mrb[60].mxu0 %vm203_vm1, %v71_v3  ;;  %5838 = vmatprep.subr.bf16.mxu1 %v5844_v0 }
  0x80   :  { %5633 = vmatmul.mubr.msk.f32.vlgmr.msra.gmra.mrb[60].mxu1 %vm203_vm1, %v72_v5  ;;  %5837 = vmatpush3.bf16.msra.mxu0 %v5836_v4 }
  0x81   :  { %5840 = vmatpush3.bf16.msra.mxu1 %v5839_v7  ;;  %5639 = vmatprep.mubr.msk.f32.mxu0 %vm5845_vm0, %v5846_v6 }
  0x82   :  { %5646 = vmatprep.mubr.msk.f32.mxu1 %vm5845_vm0, %v5846_v6 }
  0x83   :  { %5640 = vmatmul.mubr.msk.f32.vlgmr.msra.gmra.mrb[62].mxu0 %vm203_vm1, %v73_v8 }
  0x84   :  { %5647 = vmatmul.mubr.msk.f32.vlgmr.msra.gmra.mrb[62].mxu1 %vm203_vm1, %v74_v9 }
  0xda   :  { %v273_v0 = vpop.f32.mrb[0].mxu0 }
  0xdb   :  { %4877 = vst.msk [vmem:[%s6952_s2] sm:$0xf] %vm4876_vm2, %v273_v0  ;;  %v346_v10 = vpop.f32.mrb[0].mxu1  ;;  %v5207_v11 = vpop.f32.mrb[1].mxu0 }
  0xdc   :  { %4878 = vst.msk [vmem:[%s6952_s2 + $0x4] sm:$0xf] %vm4876_vm2, %v346_v10  ;;  %v5214_v12 = vpop.f32.mrb[1].mxu1 }
  0xde   :  { %v419_v6 = vpop.f32.mrb[2].mxu0 }
  0xdf   :  { %4879 = vst.msk [vmem:[%s6952_s2 + $0x8] sm:$0xf] %vm4876_vm2, %v419_v6  ;;  %v492_v13 = vpop.f32.mrb[2].mxu1  ;;  %v5221_v14 = vpop.f32.mrb[3].mxu0 }
  0xe0   :  { %4880 = vst.msk [vmem:[%s6952_s2 + $0xc] sm:$0xf] %vm4876_vm2, %v492_v13  ;;  %v5228_v15 = vpop.f32.mrb[3].mxu1 }
  0xe2   :  { %v565_v16 = vpop.f32.mrb[4].mxu0 }
  0xe3   :  { %4881 = vst.msk [vmem:[%s6952_s2 + $0x10] sm:$0xf] %vm4876_vm2, %v565_v16  ;;  %v638_v17 = vpop.f32.mrb[4].mxu1  ;;  %v5235_v18 = vpop.f32.mrb[5].mxu0 }
  0xe4   :  { %4882 = vst.msk [vmem:[%s6952_s2 + $0x14] sm:$0xf] %vm4876_vm2, %v638_v17  ;;  %v5242_v19 = vpop.f32.mrb[5].mxu1 }
  0xe6   :  { %v711_v20 = vpop.f32.mrb[6].mxu0 }
  0xe7   :  { %4883 = vst.msk [vmem:[%s6952_s2 + $0x18] sm:$0xf] %vm4876_vm2, %v711_v20  ;;  %v784_v21 = vpop.f32.mrb[6].mxu1  ;;  %v5249_v22 = vpop.f32.mrb[7].mxu0 }
  0xe8   :  { %4884 = vst.msk [vmem:[%s6952_s2 + $0x1c] sm:$0xf] %vm4876_vm2, %v784_v21  ;;  %v5256_v23 = vpop.f32.mrb[7].mxu1 }
  0xea   :  { %v857_v24 = vpop.f32.mrb[8].mxu0 }
  0xeb   :  { %4885 = vst.msk [vmem:[%s6952_s2 + $0x20] sm:$0xf] %vm4876_vm2, %v857_v24  ;;  %v930_v25 = vpop.f32.mrb[8].mxu1  ;;  %v5263_v26 = vpop.f32.mrb[9].mxu0 }
  0xec   :  { %4886 = vst.msk [vmem:[%s6952_s2 + $0x24] sm:$0xf] %vm4876_vm2, %v930_v25  ;;  %v5270_v27 = vpop.f32.mrb[9].mxu1 }
  0xee   :  { %v1003_v28 = vpop.f32.mrb[10].mxu0 }
  0xef   :  { %4887 = vst.msk [vmem:[%s6952_s2 + $0x28] sm:$0xf] %vm4876_vm2, %v1003_v28  ;;  %v1076_v29 = vpop.f32.mrb[10].mxu1  ;;  %v5277_v30 = vpop.f32.mrb[11].mxu0 }
  0xf0   :  { %4888 = vst.msk [vmem:[%s6952_s2 + $0x2c] sm:$0xf] %vm4876_vm2, %v1076_v29  ;;  %v5284_v31 = vpop.f32.mrb[11].mxu1 }
  0xf2   :  { %v1149_v32 = vpop.f32.mrb[12].mxu0 }
  0xf3   :  { %4889 = vst.msk [vmem:[%s6952_s2 + $0x30] sm:$0xf] %vm4876_vm2, %v1149_v32  ;;  %v1222_v33 = vpop.f32.mrb[12].mxu1  ;;  %v5291_v34 = vpop.f32.mrb[13].mxu0 }
  0xf4   :  { %4890 = vst.msk [vmem:[%s6952_s2 + $0x34] sm:$0xf] %vm4876_vm2, %v1222_v33  ;;  %v5298_v35 = vpop.f32.mrb[13].mxu1 }
  0xf6   :  { %v1295_v36 = vpop.f32.mrb[14].mxu0 }
  0xf7   :  { %4891 = vst.msk [vmem:[%s6952_s2 + $0x38] sm:$0xf] %vm4876_vm2, %v1295_v36  ;;  %v1368_v37 = vpop.f32.mrb[14].mxu1  ;;  %v5305_v38 = vpop.f32.mrb[15].mxu0 }
  0xf8   :  { %4892 = vst.msk [vmem:[%s6952_s2 + $0x3c] sm:$0xf] %vm4876_vm2, %v1368_v37  ;;  %v5312_v39 = vpop.f32.mrb[15].mxu1 }
  0xfa   :  { %v1441_v40 = vpop.f32.mrb[16].mxu0 }
  0xfb   :  { %4893 = vst.msk [vmem:[%s6952_s2 + $0x40] sm:$0xf] %vm4876_vm2, %v1441_v40  ;;  %v1514_v41 = vpop.f32.mrb[16].mxu1  ;;  %v5319_v42 = vpop.f32.mrb[17].mxu0 }
  0xfc   :  { %4894 = vst.msk [vmem:[%s6952_s2 + $0x44] sm:$0xf] %vm4876_vm2, %v1514_v41  ;;  %v5326_v43 = vpop.f32.mrb[17].mxu1 }
  0xfe   :  { %v1587_v44 = vpop.f32.mrb[18].mxu0 }
  0xff   :  { %4895 = vst.msk [vmem:[%s6952_s2 + $0x48] sm:$0xf] %vm4876_vm2, %v1587_v44  ;;  %v1660_v45 = vpop.f32.mrb[18].mxu1  ;;  %v5333_v46 = vpop.f32.mrb[19].mxu0 }
 0x100   :  { %4896 = vst.msk [vmem:[%s6952_s2 + $0x4c] sm:$0xf] %vm4876_vm2, %v1660_v45  ;;  %v5340_v47 = vpop.f32.mrb[19].mxu1 }
 0x102   :  { %v1733_v48 = vpop.f32.mrb[20].mxu0 }
 0x103   :  { %4897 = vst.msk [vmem:[%s6952_s2 + $0x50] sm:$0xf] %vm4876_vm2, %v1733_v48  ;;  %v1806_v49 = vpop.f32.mrb[20].mxu1  ;;  %v5347_v50 = vpop.f32.mrb[21].mxu0 }
 0x104   :  { %4898 = vst.msk [vmem:[%s6952_s2 + $0x54] sm:$0xf] %vm4876_vm2, %v1806_v49  ;;  %v5354_v51 = vpop.f32.mrb[21].mxu1 }
 0x106   :  { %v1879_v52 = vpop.f32.mrb[22].mxu0 }
 0x107   :  { %4899 = vst.msk [vmem:[%s6952_s2 + $0x58] sm:$0xf] %vm4876_vm2, %v1879_v52  ;;  %v1952_v53 = vpop.f32.mrb[22].mxu1  ;;  %v5361_v54 = vpop.f32.mrb[23].mxu0 }
 0x108   :  { %4900 = vst.msk [vmem:[%s6952_s2 + $0x5c] sm:$0xf] %vm4876_vm2, %v1952_v53  ;;  %v5368_v55 = vpop.f32.mrb[23].mxu1 }
 0x10a   :  { %v2025_v56 = vpop.f32.mrb[24].mxu0 }
 0x10b   :  { %4901 = vst.msk [vmem:[%s6952_s2 + $0x60] sm:$0xf] %vm4876_vm2, %v2025_v56  ;;  %v2098_v57 = vpop.f32.mrb[24].mxu1  ;;  %v5375_v58 = vpop.f32.mrb[25].mxu0 }
 0x10c   :  { %4902 = vst.msk [vmem:[%s6952_s2 + $0x64] sm:$0xf] %vm4876_vm2, %v2098_v57  ;;  %v5382_v59 = vpop.f32.mrb[25].mxu1 }
 0x10e   :  { %v2171_v60 = vpop.f32.mrb[26].mxu0 }
 0x10f   :  { %4903 = vst.msk [vmem:[%s6952_s2 + $0x68] sm:$0xf] %vm4876_vm2, %v2171_v60  ;;  %v2244_v61 = vpop.f32.mrb[26].mxu1  ;;  %v5389_v62 = vpop.f32.mrb[27].mxu0 }
 0x110   :  { %4904 = vst.msk [vmem:[%s6952_s2 + $0x6c] sm:$0xf] %vm4876_vm2, %v2244_v61  ;;  %v5396_v63 = vpop.f32.mrb[27].mxu1 }
 0x112   :  { %v2317_v1 = vpop.f32.mrb[28].mxu0 }
 0x113   :  { %4905 = vst.msk [vmem:[%s6952_s2 + $0x70] sm:$0xf] %vm4876_vm2, %v2317_v1  ;;  %v2390_v2 = vpop.f32.mrb[28].mxu1  ;;  %v5403_v3 = vpop.f32.mrb[29].mxu0 }
 0x114   :  { %4906 = vst.msk [vmem:[%s6952_s2 + $0x74] sm:$0xf] %vm4876_vm2, %v2390_v2  ;;  %v5410_v4 = vpop.f32.mrb[29].mxu1 }
 0x116   :  { %v2463_v5 = vpop.f32.mrb[30].mxu0 }
 0x117   :  { %4907 = vst.msk [vmem:[%s6952_s2 + $0x78] sm:$0xf] %vm4876_vm2, %v2463_v5  ;;  %v2536_v7 = vpop.f32.mrb[30].mxu1  ;;  %v5417_v8 = vpop.f32.mrb[31].mxu0 }
 0x118   :  { %4908 = vst.msk [vmem:[%s6952_s2 + $0x7c] sm:$0xf] %vm4876_vm2, %v2536_v7  ;;  %v5424_v9 = vpop.f32.mrb[31].mxu1 }
 0x11a   :  { %v2609_v0 = vpop.f32.mrb[32].mxu0 }
 0x11b   :  { %4909 = vst.msk [vmem:[%s6952_s2 + $0x80] sm:$0xf] %vm4876_vm2, %v2609_v0  ;;  %v2682_v10 = vpop.f32.mrb[32].mxu1  ;;  %v5431_v11 = vpop.f32.mrb[33].mxu0 }
 0x11c   :  { %4910 = vst.msk [vmem:[%s6952_s2 + $0x84] sm:$0xf] %vm4876_vm2, %v2682_v10  ;;  %v5438_v12 = vpop.f32.mrb[33].mxu1 }
 0x11e   :  { %v2755_v6 = vpop.f32.mrb[34].mxu0 }
 0x11f   :  { %4911 = vst.msk [vmem:[%s6952_s2 + $0x88] sm:$0xf] %vm4876_vm2, %v2755_v6  ;;  %v2828_v13 = vpop.f32.mrb[34].mxu1  ;;  %v5445_v14 = vpop.f32.mrb[35].mxu0 }
 0x120   :  { %4912 = vst.msk [vmem:[%s6952_s2 + $0x8c] sm:$0xf] %vm4876_vm2, %v2828_v13  ;;  %v5452_v15 = vpop.f32.mrb[35].mxu1 }
 0x122   :  { %v2901_v16 = vpop.f32.mrb[36].mxu0 }
 0x123   :  { %4913 = vst.msk [vmem:[%s6952_s2 + $0x90] sm:$0xf] %vm4876_vm2, %v2901_v16  ;;  %v2974_v17 = vpop.f32.mrb[36].mxu1  ;;  %v5459_v18 = vpop.f32.mrb[37].mxu0 }
 0x124   :  { %4914 = vst.msk [vmem:[%s6952_s2 + $0x94] sm:$0xf] %vm4876_vm2, %v2974_v17  ;;  %v5466_v19 = vpop.f32.mrb[37].mxu1 }
 0x126   :  { %v3047_v20 = vpop.f32.mrb[38].mxu0 }
 0x127   :  { %4915 = vst.msk [vmem:[%s6952_s2 + $0x98] sm:$0xf] %vm4876_vm2, %v3047_v20  ;;  %v3120_v21 = vpop.f32.mrb[38].mxu1  ;;  %v5473_v22 = vpop.f32.mrb[39].mxu0 }
 0x128   :  { %4916 = vst.msk [vmem:[%s6952_s2 + $0x9c] sm:$0xf] %vm4876_vm2, %v3120_v21  ;;  %v5480_v23 = vpop.f32.mrb[39].mxu1 }
 0x12a   :  { %v3193_v24 = vpop.f32.mrb[40].mxu0 }
 0x12b   :  { %4917 = vst.msk [vmem:[%s6952_s2 + $0xa0] sm:$0xf] %vm4876_vm2, %v3193_v24  ;;  %v3266_v25 = vpop.f32.mrb[40].mxu1  ;;  %v5487_v26 = vpop.f32.mrb[41].mxu0 }
 0x12c   :  { %4918 = vst.msk [vmem:[%s6952_s2 + $0xa4] sm:$0xf] %vm4876_vm2, %v3266_v25  ;;  %v5494_v27 = vpop.f32.mrb[41].mxu1 }
 0x12e   :  { %v3339_v28 = vpop.f32.mrb[42].mxu0 }
 0x12f   :  { %4919 = vst.msk [vmem:[%s6952_s2 + $0xa8] sm:$0xf] %vm4876_vm2, %v3339_v28  ;;  %v3412_v29 = vpop.f32.mrb[42].mxu1  ;;  %v5501_v30 = vpop.f32.mrb[43].mxu0 }
 0x130   :  { %4920 = vst.msk [vmem:[%s6952_s2 + $0xac] sm:$0xf] %vm4876_vm2, %v3412_v29  ;;  %v5508_v31 = vpop.f32.mrb[43].mxu1 }
 0x132   :  { %v3485_v32 = vpop.f32.mrb[44].mxu0 }
 0x133   :  { %4921 = vst.msk [vmem:[%s6952_s2 + $0xb0] sm:$0xf] %vm4876_vm2, %v3485_v32  ;;  %v3558_v33 = vpop.f32.mrb[44].mxu1  ;;  %v5515_v34 = vpop.f32.mrb[45].mxu0 }
 0x134   :  { %4922 = vst.msk [vmem:[%s6952_s2 + $0xb4] sm:$0xf] %vm4876_vm2, %v3558_v33  ;;  %v5522_v35 = vpop.f32.mrb[45].mxu1 }
 0x136   :  { %v3631_v36 = vpop.f32.mrb[46].mxu0 }
 0x137   :  { %4923 = vst.msk [vmem:[%s6952_s2 + $0xb8] sm:$0xf] %vm4876_vm2, %v3631_v36  ;;  %v3704_v37 = vpop.f32.mrb[46].mxu1  ;;  %v5529_v38 = vpop.f32.mrb[47].mxu0 }
 0x138   :  { %4924 = vst.msk [vmem:[%s6952_s2 + $0xbc] sm:$0xf] %vm4876_vm2, %v3704_v37  ;;  %v5536_v39 = vpop.f32.mrb[47].mxu1 }
 0x13a   :  { %v3777_v40 = vpop.f32.mrb[48].mxu0 }
 0x13b   :  { %4925 = vst.msk [vmem:[%s6952_s2 + $0xc0] sm:$0xf] %vm4876_vm2, %v3777_v40  ;;  %v3850_v41 = vpop.f32.mrb[48].mxu1  ;;  %v5543_v42 = vpop.f32.mrb[49].mxu0 }
 0x13c   :  { %4926 = vst.msk [vmem:[%s6952_s2 + $0xc4] sm:$0xf] %vm4876_vm2, %v3850_v41  ;;  %v5550_v43 = vpop.f32.mrb[49].mxu1 }
 0x13e   :  { %v3923_v44 = vpop.f32.mrb[50].mxu0 }
 0x13f   :  { %4927 = vst.msk [vmem:[%s6952_s2 + $0xc8] sm:$0xf] %vm4876_vm2, %v3923_v44  ;;  %v3996_v45 = vpop.f32.mrb[50].mxu1  ;;  %v5557_v46 = vpop.f32.mrb[51].mxu0 }
 0x140   :  { %4928 = vst.msk [vmem:[%s6952_s2 + $0xcc] sm:$0xf] %vm4876_vm2, %v3996_v45  ;;  %v5564_v47 = vpop.f32.mrb[51].mxu1 }
 0x142   :  { %v4069_v48 = vpop.f32.mrb[52].mxu0 }
 0x143   :  { %4929 = vst.msk [vmem:[%s6952_s2 + $0xd0] sm:$0xf] %vm4876_vm2, %v4069_v48  ;;  %v4142_v49 = vpop.f32.mrb[52].mxu1  ;;  %v5571_v50 = vpop.f32.mrb[53].mxu0 }
 0x144   :  { %4930 = vst.msk [vmem:[%s6952_s2 + $0xd4] sm:$0xf] %vm4876_vm2, %v4142_v49  ;;  %v5578_v51 = vpop.f32.mrb[53].mxu1 }
 0x146   :  { %v4215_v52 = vpop.f32.mrb[54].mxu0 }
 0x147   :  { %4931 = vst.msk [vmem:[%s6952_s2 + $0xd8] sm:$0xf] %vm4876_vm2, %v4215_v52  ;;  %v4288_v53 = vpop.f32.mrb[54].mxu1  ;;  %v5585_v54 = vpop.f32.mrb[55].mxu0 }
 0x148   :  { %4932 = vst.msk [vmem:[%s6952_s2 + $0xdc] sm:$0xf] %vm4876_vm2, %v4288_v53  ;;  %v5592_v55 = vpop.f32.mrb[55].mxu1 }
 0x14a   :  { %v4361_v56 = vpop.f32.mrb[56].mxu0 }
 0x14b   :  { %4933 = vst.msk [vmem:[%s6952_s2 + $0xe0] sm:$0xf] %vm4876_vm2, %v4361_v56  ;;  %v4434_v57 = vpop.f32.mrb[56].mxu1  ;;  %v5599_v58 = vpop.f32.mrb[57].mxu0 }
 0x14c   :  { %4934 = vst.msk [vmem:[%s6952_s2 + $0xe4] sm:$0xf] %vm4876_vm2, %v4434_v57  ;;  %v5606_v59 = vpop.f32.mrb[57].mxu1 }
 0x14e   :  { %v4507_v60 = vpop.f32.mrb[58].mxu0 }
 0x14f   :  { %4935 = vst.msk [vmem:[%s6952_s2 + $0xe8] sm:$0xf] %vm4876_vm2, %v4507_v60  ;;  %v4580_v61 = vpop.f32.mrb[58].mxu1  ;;  %v5613_v62 = vpop.f32.mrb[59].mxu0 }
 0x150   :  { %4936 = vst.msk [vmem:[%s6952_s2 + $0xec] sm:$0xf] %vm4876_vm2, %v4580_v61  ;;  %v5620_v63 = vpop.f32.mrb[59].mxu1 }
 0x152   :  { %v4653_v1 = vpop.f32.mrb[60].mxu0 }
 0x153   :  { %4937 = vst.msk [vmem:[%s6952_s2 + $0xf0] sm:$0xf] %vm4876_vm2, %v4653_v1  ;;  %v4726_v2 = vpop.f32.mrb[60].mxu1  ;;  %v5627_v3 = vpop.f32.mrb[61].mxu0 }
 0x154   :  { %4938 = vst.msk [vmem:[%s6952_s2 + $0xf4] sm:$0xf] %vm4876_vm2, %v4726_v2  ;;  %v5634_v4 = vpop.f32.mrb[61].mxu1 }
 0x156   :  { %v4799_v5 = vpop.f32.mrb[62].mxu0 }
 0x157   :  { %4939 = vst.msk [vmem:[%s6952_s2 + $0xf8] sm:$0xf] %vm4876_vm2, %v4799_v5  ;;  %v4872_v7 = vpop.f32.mrb[62].mxu1  ;;  %v5641_v8 = vpop.f32.mrb[63].mxu0 }
 0x158   :  { %4940 = vst.msk [vmem:[%s6952_s2 + $0xfc] sm:$0xf] %vm4876_vm2, %v4872_v7  ;;  %v5648_v9 = vpop.f32.mrb[63].mxu1 }

</bundles_post_ra>
